<compile_context>
chip_gen: v6e
topology: v6e:2x2x1
jax: 0.10.0
libtpu: 0.0.40
codegen_flags: <defaults>
</compile_context>

<pallas_src>
import jax
import jax.numpy as jnp
from jax import lax
from jax.experimental import pallas as pl
from jax.experimental.pallas import tpu as pltpu


def rnn_kernel(x_ref, wih0t_ref, whh0t_ref, b0_ref,
               w1cat_ref, b1_ref, woutt_ref, bout_ref,
               y_ref, hn_ref,
               xp_sc, h1all_sc, h0_sc, h1_sc):
    """Single invocation: full recurrence over T inside the kernel.

    Shapes (all padded): x_ref (T,B,Hp) time-major, weights (Hp,Hp) or
    (2Hp,Hp) already transposed, biases (1,Hp).
    """
    T, B, Hp = x_ref.shape

    # Hoisted layer-0 input projection for ALL time steps (no recurrence):
    # one (T*B,Hp) x (Hp,Hp) MXU pass instead of T tiny ones.
    x_all = x_ref[...].reshape(T * B, Hp)
    xp_sc[...] = (jnp.dot(x_all, wih0t_ref[...],
                          preferred_element_type=jnp.float32)
                  + b0_ref[...]).reshape(T, B, Hp)

    # Zero-initialized hidden carries (matches PyTorch __init__hidden()).
    h0_sc[...] = jnp.zeros_like(h0_sc)
    h1_sc[...] = jnp.zeros_like(h1_sc)

    # Fully unrolled time recurrence (T is small and static).
    for t in range(T):
        # Layer 0: h0 = tanh(x_t W_ih0^T + b0 + h0_prev W_hh0^T)
        h0 = jnp.tanh(xp_sc[t]
                      + jnp.dot(h0_sc[...], whh0t_ref[...],
                                preferred_element_type=jnp.float32))
        # Layer 1 (fused input/recurrent matmul):
        # h1 = tanh([h0, h1_prev] @ [W_ih1^T; W_hh1^T] + b1)
        h1 = jnp.tanh(jnp.dot(jnp.concatenate([h0, h1_sc[...]], axis=-1),
                              w1cat_ref[...],
                              preferred_element_type=jnp.float32)
                      + b1_ref[...])
        h0_sc[...] = h0
        h1_sc[...] = h1
        h1all_sc[t] = h1

    # Output projection hoisted out of the recurrence: one batched matmul and
    # a single lane-dense store of the whole (T,B,Hp) output slab.
    h1_all = h1all_sc[...].reshape(T * B, Hp)
    y_ref[...] = (jnp.dot(h1_all, woutt_ref[...],
                          preferred_element_type=jnp.float32)
                  + bout_ref[...]).reshape(T, B, Hp)

    # Final hidden states (n_layers=2, B, Hp).
    hn_ref[0] = h0_sc[...]
    hn_ref[1] = h1_sc[...]


def network_forward(x, params):
    """x: (B, T, H) float. Returns (output (B,T,H) f32, hidden (2,B,H) f32)."""
    B, T, H = x.shape
    f32 = jnp.float32
    Hp = ((H + 127) // 128) * 128      # lane-dense padding
    Bp = ((B + 7) // 8) * 8            # sublane padding

    def pad_mat_t(w):   # (H,H) PyTorch (out,in) -> transposed + zero-padded (Hp,Hp)
        return jnp.pad(w.astype(f32).T, ((0, Hp - H), (0, Hp - H)))

    def pad_bias(b):    # (H,) -> (1, Hp)
        return jnp.pad(b.astype(f32), (0, Hp - H)).reshape(1, Hp)

    wih0t = pad_mat_t(params["wih0"])
    whh0t = pad_mat_t(params["whh0"])
    wih1t = pad_mat_t(params["wih1"])
    whh1t = pad_mat_t(params["whh1"])
    woutt = pad_mat_t(params["wout"])
    b0 = pad_bias(params["bih0"] + params["bhh0"])
    b1 = pad_bias(params["bih1"] + params["bhh1"])
    bo = pad_bias(params["bout"])
    w1cat = jnp.concatenate([wih1t, whh1t], axis=0)   # (2*Hp, Hp)

    # Time-major, padded input (T, Bp, Hp).
    x_tbh = jnp.transpose(x.astype(f32), (1, 0, 2))
    x_tbh = jnp.pad(x_tbh, ((0, 0), (0, Bp - B), (0, Hp - H)))

    mat_spec = lambda shape: pl.BlockSpec(shape, lambda i: (0, 0))

    y_pad, hn_pad = pl.pallas_call(
        rnn_kernel,
        out_shape=(jax.ShapeDtypeStruct((T, Bp, Hp), f32),
                   jax.ShapeDtypeStruct((2, Bp, Hp), f32)),
        grid_spec=pltpu.PrefetchScalarGridSpec(
            num_scalar_prefetch=0,
            grid=(1,),
            in_specs=[
                pl.BlockSpec((T, Bp, Hp), lambda i: (0, 0, 0)),  # x (time-major)
                mat_spec((Hp, Hp)),        # W_ih0^T
                mat_spec((Hp, Hp)),        # W_hh0^T
                mat_spec((1, Hp)),         # b_ih0 + b_hh0
                mat_spec((2 * Hp, Hp)),    # [W_ih1^T; W_hh1^T]
                mat_spec((1, Hp)),         # b_ih1 + b_hh1
                mat_spec((Hp, Hp)),        # W_out^T
                mat_spec((1, Hp)),         # b_out
            ],
            out_specs=[
                pl.BlockSpec((T, Bp, Hp), lambda i: (0, 0, 0)),  # y (time-major)
                pl.BlockSpec((2, Bp, Hp), lambda i: (0, 0, 0)),  # final hidden
            ],
            scratch_shapes=[
                pltpu.VMEM((T, Bp, Hp), f32),   # hoisted x-projection (all steps)
                pltpu.VMEM((T, Bp, Hp), f32),   # staged per-step h1
                pltpu.VMEM((Bp, Hp), f32),      # layer-0 hidden carry
                pltpu.VMEM((Bp, Hp), f32),      # layer-1 hidden carry
            ],
        ),
        compiler_params=pltpu.CompilerParams(
            dimension_semantics=("arbitrary",)),
    )(x_tbh, wih0t, whh0t, b0, w1cat, b1, woutt, bo)

    out = jnp.transpose(y_pad[:, :B, :H], (1, 0, 2))   # (B, T, H)
    hidden = hn_pad[:, :B, :H]                         # (2, B, H)
    return out, hidden


def reference_forward(x, params):
    """Pure-JAX reference (matches PyTorch nn.RNN + nn.Linear semantics)."""
    B, T, H = x.shape
    x = x.astype(jnp.float32)
    b0 = params["bih0"] + params["bhh0"]
    b1 = params["bih1"] + params["bhh1"]

    def step(carry, x_t):
        h0, h1 = carry
        h0 = jnp.tanh(x_t @ params["wih0"].T + h0 @ params["whh0"].T + b0)
        h1 = jnp.tanh(h0 @ params["wih1"].T + h1 @ params["whh1"].T + b1)
        y = h1 @ params["wout"].T + params["bout"]
        return (h0, h1), y

    h_init = (jnp.zeros((B, H), jnp.float32), jnp.zeros((B, H), jnp.float32))
    (h0, h1), ys = lax.scan(step, h_init, jnp.transpose(x, (1, 0, 2)))
    return jnp.transpose(ys, (1, 0, 2)), jnp.stack([h0, h1], axis=0)


def init_params(key, hidden_size):
    """Deterministic init mimicking PyTorch's U(-1/sqrt(H), 1/sqrt(H))."""
    H = hidden_size
    bound = 1.0 / jnp.sqrt(jnp.float32(H))
    names_shapes = [
        ("wih0", (H, H)), ("whh0", (H, H)), ("bih0", (H,)), ("bhh0", (H,)),
        ("wih1", (H, H)), ("whh1", (H, H)), ("bih1", (H,)), ("bhh1", (H,)),
        ("wout", (H, H)), ("bout", (H,)),
    ]
    keys = jax.random.split(key, len(names_shapes))
    return {
        name: jax.random.uniform(k, shape, jnp.float32, -bound, bound)
        for (name, shape), k in zip(names_shapes, keys)
    }


if __name__ == "__main__":
    B, T, H = 8, 8, 32  # batch, seq, hidden (n_layers=2 fixed by the module)

    key = jax.random.PRNGKey(0)
    pkey, xkey = jax.random.split(key)
    params = init_params(pkey, H)
    x = jax.random.normal(xkey, (B, T, H), dtype=jnp.float32)

    out, hidden = network_forward(x, params)
    out = jax.block_until_ready(out)
    hidden = jax.block_until_ready(hidden)

    ref_out, ref_hidden = reference_forward(x, params)
    assert out.shape == (B, T, H) and hidden.shape == (2, B, H)
    assert jnp.allclose(out, ref_out, atol=1e-5, rtol=1e-5)
    assert jnp.allclose(hidden, ref_hidden, atol=1e-5, rtol=1e-5)

    print("KERNEL_OK")
</pallas_src>

<mosaic_0001>
module attributes {stable_mosaic.version = 11 : i64} {
  func.func @rnn_kernel(%arg0: i32, %arg1: memref<8x8x128xf32, #tpu.memory_space<vmem>>, %arg2: memref<128x128xf32, #tpu.memory_space<vmem>>, %arg3: memref<128x128xf32, #tpu.memory_space<vmem>>, %arg4: memref<1x128xf32, #tpu.memory_space<vmem>>, %arg5: memref<256x128xf32, #tpu.memory_space<vmem>>, %arg6: memref<1x128xf32, #tpu.memory_space<vmem>>, %arg7: memref<128x128xf32, #tpu.memory_space<vmem>>, %arg8: memref<1x128xf32, #tpu.memory_space<vmem>>, %arg9: memref<8x8x128xf32, #tpu.memory_space<vmem>>, %arg10: memref<2x8x128xf32, #tpu.memory_space<vmem>>, %arg11: memref<8x8x128xf32, #tpu.memory_space<vmem>>, %arg12: memref<8x8x128xf32, #tpu.memory_space<vmem>>, %arg13: memref<8x128xf32, #tpu.memory_space<vmem>>, %arg14: memref<8x128xf32, #tpu.memory_space<vmem>>) attributes {dimension_semantics = [#tpu.dimension_semantics<arbitrary>], iteration_bounds = array<i64: 1>, scalar_prefetch = 0 : i64, scratch_operands = 4 : i64, tpu.core_type = #tpu.core_type<tc>, window_params = [{pipeline_mode = #tpu.pipeline_mode<synchronous>, transform_indices = @transform_0, window_bounds = array<i64: 8, 8, 128>}, {pipeline_mode = #tpu.pipeline_mode<synchronous>, transform_indices = @transform_1, window_bounds = array<i64: 128, 128>}, {pipeline_mode = #tpu.pipeline_mode<synchronous>, transform_indices = @transform_2, window_bounds = array<i64: 128, 128>}, {pipeline_mode = #tpu.pipeline_mode<synchronous>, transform_indices = @transform_3, window_bounds = array<i64: 1, 128>}, {pipeline_mode = #tpu.pipeline_mode<synchronous>, transform_indices = @transform_4, window_bounds = array<i64: 256, 128>}, {pipeline_mode = #tpu.pipeline_mode<synchronous>, transform_indices = @transform_5, window_bounds = array<i64: 1, 128>}, {pipeline_mode = #tpu.pipeline_mode<synchronous>, transform_indices = @transform_6, window_bounds = array<i64: 128, 128>}, {pipeline_mode = #tpu.pipeline_mode<synchronous>, transform_indices = @transform_7, window_bounds = array<i64: 1, 128>}, {pipeline_mode = #tpu.pipeline_mode<synchronous>, transform_indices = @transform_8, window_bounds = array<i64: 8, 8, 128>}, {pipeline_mode = #tpu.pipeline_mode<synchronous>, transform_indices = @transform_9, window_bounds = array<i64: 2, 8, 128>}]} {
    %c0 = arith.constant 0 : index
    %c0_0 = arith.constant 0 : index
    %c0_1 = arith.constant 0 : index
    %0 = vector.load %arg1[%c0, %c0_0, %c0_1] : memref<8x8x128xf32, #tpu.memory_space<vmem>>, vector<8x8x128xf32>
    %1 = vector.shape_cast %0 : vector<8x8x128xf32> to vector<64x128xf32>
    %c0_2 = arith.constant 0 : index
    %c0_3 = arith.constant 0 : index
    %2 = vector.load %arg2[%c0_2, %c0_3] : memref<128x128xf32, #tpu.memory_space<vmem>>, vector<128x128xf32>
    %cst = arith.constant dense<0.000000e+00> : vector<64x128xf32>
    %3 = tpu.matmul %1, %2, %cst {dimension_numbers = #tpu.dot_dimension_numbers<[1], [0], [0], [1], [0, 0, 1, 1], [], []>} : vector<64x128xf32>, vector<128x128xf32>, vector<64x128xf32> -> vector<64x128xf32>
    %c0_4 = arith.constant 0 : index
    %c0_5 = arith.constant 0 : index
    %4 = vector.load %arg4[%c0_4, %c0_5] : memref<1x128xf32, #tpu.memory_space<vmem>>, vector<1x128xf32>
    %5 = vector.broadcast %4 : vector<1x128xf32> to vector<64x128xf32>
    %6 = arith.addf %3, %5 : vector<64x128xf32>
    %7 = vector.shape_cast %6 : vector<64x128xf32> to vector<8x8x128xf32>
    %c0_6 = arith.constant 0 : index
    %c0_7 = arith.constant 0 : index
    %c0_8 = arith.constant 0 : index
    %8 = vector.load %arg11[%c0_6, %c0_7, %c0_8] : memref<8x8x128xf32, #tpu.memory_space<vmem>>, vector<8x8x128xf32>
    tpu.vector_store %arg11[%c0_6, %c0_7, %c0_8], %7 {strides = array<i32>} : memref<8x8x128xf32, #tpu.memory_space<vmem>>, vector<8x8x128xf32>,
    %cst_9 = arith.constant 0.000000e+00 : f32
    %9 = vector.broadcast %cst_9 : f32 to vector<8x128xf32>
    %c0_10 = arith.constant 0 : index
    %c0_11 = arith.constant 0 : index
    %10 = vector.load %arg13[%c0_10, %c0_11] : memref<8x128xf32, #tpu.memory_space<vmem>>, vector<8x128xf32>
    tpu.vector_store %arg13[%c0_10, %c0_11], %9 {strides = array<i32>} : memref<8x128xf32, #tpu.memory_space<vmem>>, vector<8x128xf32>,
    %cst_12 = arith.constant 0.000000e+00 : f32
    %11 = vector.broadcast %cst_12 : f32 to vector<8x128xf32>
    %c0_13 = arith.constant 0 : index
    %c0_14 = arith.constant 0 : index
    %12 = vector.load %arg14[%c0_13, %c0_14] : memref<8x128xf32, #tpu.memory_space<vmem>>, vector<8x128xf32>
    tpu.vector_store %arg14[%c0_13, %c0_14], %11 {strides = array<i32>} : memref<8x128xf32, #tpu.memory_space<vmem>>, vector<8x128xf32>,
    %c0_15 = arith.constant 0 : index
    %c0_16 = arith.constant 0 : index
    %c0_17 = arith.constant 0 : index
    %13 = vector.load %arg11[%c0_15, %c0_16, %c0_17] : memref<8x8x128xf32, #tpu.memory_space<vmem>>, vector<1x8x128xf32>
    %14 = vector.shape_cast %13 : vector<1x8x128xf32> to vector<8x128xf32>
    %c0_18 = arith.constant 0 : index
    %c0_19 = arith.constant 0 : index
    %15 = vector.load %arg13[%c0_18, %c0_19] : memref<8x128xf32, #tpu.memory_space<vmem>>, vector<8x128xf32>
    %c0_20 = arith.constant 0 : index
    %c0_21 = arith.constant 0 : index
    %16 = vector.load %arg3[%c0_20, %c0_21] : memref<128x128xf32, #tpu.memory_space<vmem>>, vector<128x128xf32>
    %cst_22 = arith.constant dense<0.000000e+00> : vector<8x128xf32>
    %17 = tpu.matmul %15, %16, %cst_22 {dimension_numbers = #tpu.dot_dimension_numbers<[1], [0], [0], [1], [0, 0, 1, 1], [], []>} : vector<8x128xf32>, vector<128x128xf32>, vector<8x128xf32> -> vector<8x128xf32>
    %18 = arith.addf %14, %17 : vector<8x128xf32>
    %19 = math.tanh %18 : vector<8x128xf32>
    %c0_23 = arith.constant 0 : index
    %c0_24 = arith.constant 0 : index
    %20 = vector.load %arg14[%c0_23, %c0_24] : memref<8x128xf32, #tpu.memory_space<vmem>>, vector<8x128xf32>
    %21 = tpu.concatenate %19, %20 in 1 : vector<8x128xf32>, vector<8x128xf32> -> vector<8x256xf32>
    %c0_25 = arith.constant 0 : index
    %c0_26 = arith.constant 0 : index
    %22 = vector.load %arg5[%c0_25, %c0_26] : memref<256x128xf32, #tpu.memory_space<vmem>>, vector<256x128xf32>
    %cst_27 = arith.constant dense<0.000000e+00> : vector<8x128xf32>
    %23 = tpu.matmul %21, %22, %cst_27 {dimension_numbers = #tpu.dot_dimension_numbers<[1], [0], [0], [1], [0, 0, 1, 1], [], []>} : vector<8x256xf32>, vector<256x128xf32>, vector<8x128xf32> -> vector<8x128xf32>
    %c0_28 = arith.constant 0 : index
    %c0_29 = arith.constant 0 : index
    %24 = vector.load %arg6[%c0_28, %c0_29] : memref<1x128xf32, #tpu.memory_space<vmem>>, vector<1x128xf32>
    %25 = vector.broadcast %24 : vector<1x128xf32> to vector<8x128xf32>
    %26 = arith.addf %23, %25 : vector<8x128xf32>
    %27 = math.tanh %26 : vector<8x128xf32>
    %c0_30 = arith.constant 0 : index
    %c0_31 = arith.constant 0 : index
    %28 = vector.load %arg13[%c0_30, %c0_31] : memref<8x128xf32, #tpu.memory_space<vmem>>, vector<8x128xf32>
    tpu.vector_store %arg13[%c0_30, %c0_31], %19 {strides = array<i32>} : memref<8x128xf32, #tpu.memory_space<vmem>>, vector<8x128xf32>,
    %c0_32 = arith.constant 0 : index
    %c0_33 = arith.constant 0 : index
    %29 = vector.load %arg14[%c0_32, %c0_33] : memref<8x128xf32, #tpu.memory_space<vmem>>, vector<8x128xf32>
    tpu.vector_store %arg14[%c0_32, %c0_33], %27 {strides = array<i32>} : memref<8x128xf32, #tpu.memory_space<vmem>>, vector<8x128xf32>,
    %c0_34 = arith.constant 0 : index
    %c0_35 = arith.constant 0 : index
    %c0_36 = arith.constant 0 : index
    %30 = vector.load %arg12[%c0_34, %c0_35, %c0_36] : memref<8x8x128xf32, #tpu.memory_space<vmem>>, vector<1x8x128xf32>
    %31 = vector.shape_cast %30 : vector<1x8x128xf32> to vector<8x128xf32>
    %32 = vector.shape_cast %27 : vector<8x128xf32> to vector<1x8x128xf32>
    tpu.vector_store %arg12[%c0_34, %c0_35, %c0_36], %32 {strides = array<i32>} : memref<8x8x128xf32, #tpu.memory_space<vmem>>, vector<1x8x128xf32>,
    %c1 = arith.constant 1 : index
    %c0_37 = arith.constant 0 : index
    %c0_38 = arith.constant 0 : index
    %33 = vector.load %arg11[%c1, %c0_37, %c0_38] : memref<8x8x128xf32, #tpu.memory_space<vmem>>, vector<1x8x128xf32>
    %34 = vector.shape_cast %33 : vector<1x8x128xf32> to vector<8x128xf32>
    %c0_39 = arith.constant 0 : index
    %c0_40 = arith.constant 0 : index
    %35 = vector.load %arg13[%c0_39, %c0_40] : memref<8x128xf32, #tpu.memory_space<vmem>>, vector<8x128xf32>
    %c0_41 = arith.constant 0 : index
    %c0_42 = arith.constant 0 : index
    %36 = vector.load %arg3[%c0_41, %c0_42] : memref<128x128xf32, #tpu.memory_space<vmem>>, vector<128x128xf32>
    %cst_43 = arith.constant dense<0.000000e+00> : vector<8x128xf32>
    %37 = tpu.matmul %35, %36, %cst_43 {dimension_numbers = #tpu.dot_dimension_numbers<[1], [0], [0], [1], [0, 0, 1, 1], [], []>} : vector<8x128xf32>, vector<128x128xf32>, vector<8x128xf32> -> vector<8x128xf32>
    %38 = arith.addf %34, %37 : vector<8x128xf32>
    %39 = math.tanh %38 : vector<8x128xf32>
    %c0_44 = arith.constant 0 : index
    %c0_45 = arith.constant 0 : index
    %40 = vector.load %arg14[%c0_44, %c0_45] : memref<8x128xf32, #tpu.memory_space<vmem>>, vector<8x128xf32>
    %41 = tpu.concatenate %39, %40 in 1 : vector<8x128xf32>, vector<8x128xf32> -> vector<8x256xf32>
    %c0_46 = arith.constant 0 : index
    %c0_47 = arith.constant 0 : index
    %42 = vector.load %arg5[%c0_46, %c0_47] : memref<256x128xf32, #tpu.memory_space<vmem>>, vector<256x128xf32>
    %cst_48 = arith.constant dense<0.000000e+00> : vector<8x128xf32>
    %43 = tpu.matmul %41, %42, %cst_48 {dimension_numbers = #tpu.dot_dimension_numbers<[1], [0], [0], [1], [0, 0, 1, 1], [], []>} : vector<8x256xf32>, vector<256x128xf32>, vector<8x128xf32> -> vector<8x128xf32>
    %c0_49 = arith.constant 0 : index
    %c0_50 = arith.constant 0 : index
    %44 = vector.load %arg6[%c0_49, %c0_50] : memref<1x128xf32, #tpu.memory_space<vmem>>, vector<1x128xf32>
    %45 = vector.broadcast %44 : vector<1x128xf32> to vector<8x128xf32>
    %46 = arith.addf %43, %45 : vector<8x128xf32>
    %47 = math.tanh %46 : vector<8x128xf32>
    %c0_51 = arith.constant 0 : index
    %c0_52 = arith.constant 0 : index
    %48 = vector.load %arg13[%c0_51, %c0_52] : memref<8x128xf32, #tpu.memory_space<vmem>>, vector<8x128xf32>
    tpu.vector_store %arg13[%c0_51, %c0_52], %39 {strides = array<i32>} : memref<8x128xf32, #tpu.memory_space<vmem>>, vector<8x128xf32>,
    %c0_53 = arith.constant 0 : index
    %c0_54 = arith.constant 0 : index
    %49 = vector.load %arg14[%c0_53, %c0_54] : memref<8x128xf32, #tpu.memory_space<vmem>>, vector<8x128xf32>
    tpu.vector_store %arg14[%c0_53, %c0_54], %47 {strides = array<i32>} : memref<8x128xf32, #tpu.memory_space<vmem>>, vector<8x128xf32>,
    %c1_55 = arith.constant 1 : index
    %c0_56 = arith.constant 0 : index
    %c0_57 = arith.constant 0 : index
    %50 = vector.load %arg12[%c1_55, %c0_56, %c0_57] : memref<8x8x128xf32, #tpu.memory_space<vmem>>, vector<1x8x128xf32>
    %51 = vector.shape_cast %50 : vector<1x8x128xf32> to vector<8x128xf32>
    %52 = vector.shape_cast %47 : vector<8x128xf32> to vector<1x8x128xf32>
    tpu.vector_store %arg12[%c1_55, %c0_56, %c0_57], %52 {strides = array<i32>} : memref<8x8x128xf32, #tpu.memory_space<vmem>>, vector<1x8x128xf32>,
    %c2 = arith.constant 2 : index
    %c0_58 = arith.constant 0 : index
    %c0_59 = arith.constant 0 : index
    %53 = vector.load %arg11[%c2, %c0_58, %c0_59] : memref<8x8x128xf32, #tpu.memory_space<vmem>>, vector<1x8x128xf32>
    %54 = vector.shape_cast %53 : vector<1x8x128xf32> to vector<8x128xf32>
    %c0_60 = arith.constant 0 : index
    %c0_61 = arith.constant 0 : index
    %55 = vector.load %arg13[%c0_60, %c0_61] : memref<8x128xf32, #tpu.memory_space<vmem>>, vector<8x128xf32>
    %c0_62 = arith.constant 0 : index
    %c0_63 = arith.constant 0 : index
    %56 = vector.load %arg3[%c0_62, %c0_63] : memref<128x128xf32, #tpu.memory_space<vmem>>, vector<128x128xf32>
    %cst_64 = arith.constant dense<0.000000e+00> : vector<8x128xf32>
    %57 = tpu.matmul %55, %56, %cst_64 {dimension_numbers = #tpu.dot_dimension_numbers<[1], [0], [0], [1], [0, 0, 1, 1], [], []>} : vector<8x128xf32>, vector<128x128xf32>, vector<8x128xf32> -> vector<8x128xf32>
    %58 = arith.addf %54, %57 : vector<8x128xf32>
    %59 = math.tanh %58 : vector<8x128xf32>
    %c0_65 = arith.constant 0 : index
    %c0_66 = arith.constant 0 : index
    %60 = vector.load %arg14[%c0_65, %c0_66] : memref<8x128xf32, #tpu.memory_space<vmem>>, vector<8x128xf32>
    %61 = tpu.concatenate %59, %60 in 1 : vector<8x128xf32>, vector<8x128xf32> -> vector<8x256xf32>
    %c0_67 = arith.constant 0 : index
    %c0_68 = arith.constant 0 : index
    %62 = vector.load %arg5[%c0_67, %c0_68] : memref<256x128xf32, #tpu.memory_space<vmem>>, vector<256x128xf32>
    %cst_69 = arith.constant dense<0.000000e+00> : vector<8x128xf32>
    %63 = tpu.matmul %61, %62, %cst_69 {dimension_numbers = #tpu.dot_dimension_numbers<[1], [0], [0], [1], [0, 0, 1, 1], [], []>} : vector<8x256xf32>, vector<256x128xf32>, vector<8x128xf32> -> vector<8x128xf32>
    %c0_70 = arith.constant 0 : index
    %c0_71 = arith.constant 0 : index
    %64 = vector.load %arg6[%c0_70, %c0_71] : memref<1x128xf32, #tpu.memory_space<vmem>>, vector<1x128xf32>
    %65 = vector.broadcast %64 : vector<1x128xf32> to vector<8x128xf32>
    %66 = arith.addf %63, %65 : vector<8x128xf32>
    %67 = math.tanh %66 : vector<8x128xf32>
    %c0_72 = arith.constant 0 : index
    %c0_73 = arith.constant 0 : index
    %68 = vector.load %arg13[%c0_72, %c0_73] : memref<8x128xf32, #tpu.memory_space<vmem>>, vector<8x128xf32>
    tpu.vector_store %arg13[%c0_72, %c0_73], %59 {strides = array<i32>} : memref<8x128xf32, #tpu.memory_space<vmem>>, vector<8x128xf32>,
    %c0_74 = arith.constant 0 : index
    %c0_75 = arith.constant 0 : index
    %69 = vector.load %arg14[%c0_74, %c0_75] : memref<8x128xf32, #tpu.memory_space<vmem>>, vector<8x128xf32>
    tpu.vector_store %arg14[%c0_74, %c0_75], %67 {strides = array<i32>} : memref<8x128xf32, #tpu.memory_space<vmem>>, vector<8x128xf32>,
    %c2_76 = arith.constant 2 : index
    %c0_77 = arith.constant 0 : index
    %c0_78 = arith.constant 0 : index
    %70 = vector.load %arg12[%c2_76, %c0_77, %c0_78] : memref<8x8x128xf32, #tpu.memory_space<vmem>>, vector<1x8x128xf32>
    %71 = vector.shape_cast %70 : vector<1x8x128xf32> to vector<8x128xf32>
    %72 = vector.shape_cast %67 : vector<8x128xf32> to vector<1x8x128xf32>
    tpu.vector_store %arg12[%c2_76, %c0_77, %c0_78], %72 {strides = array<i32>} : memref<8x8x128xf32, #tpu.memory_space<vmem>>, vector<1x8x128xf32>,
    %c3 = arith.constant 3 : index
    %c0_79 = arith.constant 0 : index
    %c0_80 = arith.constant 0 : index
    %73 = vector.load %arg11[%c3, %c0_79, %c0_80] : memref<8x8x128xf32, #tpu.memory_space<vmem>>, vector<1x8x128xf32>
    %74 = vector.shape_cast %73 : vector<1x8x128xf32> to vector<8x128xf32>
    %c0_81 = arith.constant 0 : index
    %c0_82 = arith.constant 0 : index
    %75 = vector.load %arg13[%c0_81, %c0_82] : memref<8x128xf32, #tpu.memory_space<vmem>>, vector<8x128xf32>
    %c0_83 = arith.constant 0 : index
    %c0_84 = arith.constant 0 : index
    %76 = vector.load %arg3[%c0_83, %c0_84] : memref<128x128xf32, #tpu.memory_space<vmem>>, vector<128x128xf32>
    %cst_85 = arith.constant dense<0.000000e+00> : vector<8x128xf32>
    %77 = tpu.matmul %75, %76, %cst_85 {dimension_numbers = #tpu.dot_dimension_numbers<[1], [0], [0], [1], [0, 0, 1, 1], [], []>} : vector<8x128xf32>, vector<128x128xf32>, vector<8x128xf32> -> vector<8x128xf32>
    %78 = arith.addf %74, %77 : vector<8x128xf32>
    %79 = math.tanh %78 : vector<8x128xf32>
    %c0_86 = arith.constant 0 : index
    %c0_87 = arith.constant 0 : index
    %80 = vector.load %arg14[%c0_86, %c0_87] : memref<8x128xf32, #tpu.memory_space<vmem>>, vector<8x128xf32>
    %81 = tpu.concatenate %79, %80 in 1 : vector<8x128xf32>, vector<8x128xf32> -> vector<8x256xf32>
    %c0_88 = arith.constant 0 : index
    %c0_89 = arith.constant 0 : index
    %82 = vector.load %arg5[%c0_88, %c0_89] : memref<256x128xf32, #tpu.memory_space<vmem>>, vector<256x128xf32>
    %cst_90 = arith.constant dense<0.000000e+00> : vector<8x128xf32>
    %83 = tpu.matmul %81, %82, %cst_90 {dimension_numbers = #tpu.dot_dimension_numbers<[1], [0], [0], [1], [0, 0, 1, 1], [], []>} : vector<8x256xf32>, vector<256x128xf32>, vector<8x128xf32> -> vector<8x128xf32>
    %c0_91 = arith.constant 0 : index
    %c0_92 = arith.constant 0 : index
    %84 = vector.load %arg6[%c0_91, %c0_92] : memref<1x128xf32, #tpu.memory_space<vmem>>, vector<1x128xf32>
    %85 = vector.broadcast %84 : vector<1x128xf32> to vector<8x128xf32>
    %86 = arith.addf %83, %85 : vector<8x128xf32>
    %87 = math.tanh %86 : vector<8x128xf32>
    %c0_93 = arith.constant 0 : index
    %c0_94 = arith.constant 0 : index
    %88 = vector.load %arg13[%c0_93, %c0_94] : memref<8x128xf32, #tpu.memory_space<vmem>>, vector<8x128xf32>
    tpu.vector_store %arg13[%c0_93, %c0_94], %79 {strides = array<i32>} : memref<8x128xf32, #tpu.memory_space<vmem>>, vector<8x128xf32>,
    %c0_95 = arith.constant 0 : index
    %c0_96 = arith.constant 0 : index
    %89 = vector.load %arg14[%c0_95, %c0_96] : memref<8x128xf32, #tpu.memory_space<vmem>>, vector<8x128xf32>
    tpu.vector_store %arg14[%c0_95, %c0_96], %87 {strides = array<i32>} : memref<8x128xf32, #tpu.memory_space<vmem>>, vector<8x128xf32>,
    %c3_97 = arith.constant 3 : index
    %c0_98 = arith.constant 0 : index
    %c0_99 = arith.constant 0 : index
    %90 = vector.load %arg12[%c3_97, %c0_98, %c0_99] : memref<8x8x128xf32, #tpu.memory_space<vmem>>, vector<1x8x128xf32>
    %91 = vector.shape_cast %90 : vector<1x8x128xf32> to vector<8x128xf32>
    %92 = vector.shape_cast %87 : vector<8x128xf32> to vector<1x8x128xf32>
    tpu.vector_store %arg12[%c3_97, %c0_98, %c0_99], %92 {strides = array<i32>} : memref<8x8x128xf32, #tpu.memory_space<vmem>>, vector<1x8x128xf32>,
    %c4 = arith.constant 4 : index
    %c0_100 = arith.constant 0 : index
    %c0_101 = arith.constant 0 : index
    %93 = vector.load %arg11[%c4, %c0_100, %c0_101] : memref<8x8x128xf32, #tpu.memory_space<vmem>>, vector<1x8x128xf32>
    %94 = vector.shape_cast %93 : vector<1x8x128xf32> to vector<8x128xf32>
    %c0_102 = arith.constant 0 : index
    %c0_103 = arith.constant 0 : index
    %95 = vector.load %arg13[%c0_102, %c0_103] : memref<8x128xf32, #tpu.memory_space<vmem>>, vector<8x128xf32>
    %c0_104 = arith.constant 0 : index
    %c0_105 = arith.constant 0 : index
    %96 = vector.load %arg3[%c0_104, %c0_105] : memref<128x128xf32, #tpu.memory_space<vmem>>, vector<128x128xf32>
    %cst_106 = arith.constant dense<0.000000e+00> : vector<8x128xf32>
    %97 = tpu.matmul %95, %96, %cst_106 {dimension_numbers = #tpu.dot_dimension_numbers<[1], [0], [0], [1], [0, 0, 1, 1], [], []>} : vector<8x128xf32>, vector<128x128xf32>, vector<8x128xf32> -> vector<8x128xf32>
    %98 = arith.addf %94, %97 : vector<8x128xf32>
    %99 = math.tanh %98 : vector<8x128xf32>
    %c0_107 = arith.constant 0 : index
    %c0_108 = arith.constant 0 : index
    %100 = vector.load %arg14[%c0_107, %c0_108] : memref<8x128xf32, #tpu.memory_space<vmem>>, vector<8x128xf32>
    %101 = tpu.concatenate %99, %100 in 1 : vector<8x128xf32>, vector<8x128xf32> -> vector<8x256xf32>
    %c0_109 = arith.constant 0 : index
    %c0_110 = arith.constant 0 : index
    %102 = vector.load %arg5[%c0_109, %c0_110] : memref<256x128xf32, #tpu.memory_space<vmem>>, vector<256x128xf32>
    %cst_111 = arith.constant dense<0.000000e+00> : vector<8x128xf32>
    %103 = tpu.matmul %101, %102, %cst_111 {dimension_numbers = #tpu.dot_dimension_numbers<[1], [0], [0], [1], [0, 0, 1, 1], [], []>} : vector<8x256xf32>, vector<256x128xf32>, vector<8x128xf32> -> vector<8x128xf32>
    %c0_112 = arith.constant 0 : index
    %c0_113 = arith.constant 0 : index
    %104 = vector.load %arg6[%c0_112, %c0_113] : memref<1x128xf32, #tpu.memory_space<vmem>>, vector<1x128xf32>
    %105 = vector.broadcast %104 : vector<1x128xf32> to vector<8x128xf32>
    %106 = arith.addf %103, %105 : vector<8x128xf32>
    %107 = math.tanh %106 : vector<8x128xf32>
    %c0_114 = arith.constant 0 : index
    %c0_115 = arith.constant 0 : index
    %108 = vector.load %arg13[%c0_114, %c0_115] : memref<8x128xf32, #tpu.memory_space<vmem>>, vector<8x128xf32>
    tpu.vector_store %arg13[%c0_114, %c0_115], %99 {strides = array<i32>} : memref<8x128xf32, #tpu.memory_space<vmem>>, vector<8x128xf32>,
    %c0_116 = arith.constant 0 : index
    %c0_117 = arith.constant 0 : index
    %109 = vector.load %arg14[%c0_116, %c0_117] : memref<8x128xf32, #tpu.memory_space<vmem>>, vector<8x128xf32>
    tpu.vector_store %arg14[%c0_116, %c0_117], %107 {strides = array<i32>} : memref<8x128xf32, #tpu.memory_space<vmem>>, vector<8x128xf32>,
    %c4_118 = arith.constant 4 : index
    %c0_119 = arith.constant 0 : index
    %c0_120 = arith.constant 0 : index
    %110 = vector.load %arg12[%c4_118, %c0_119, %c0_120] : memref<8x8x128xf32, #tpu.memory_space<vmem>>, vector<1x8x128xf32>
    %111 = vector.shape_cast %110 : vector<1x8x128xf32> to vector<8x128xf32>
    %112 = vector.shape_cast %107 : vector<8x128xf32> to vector<1x8x128xf32>
    tpu.vector_store %arg12[%c4_118, %c0_119, %c0_120], %112 {strides = array<i32>} : memref<8x8x128xf32, #tpu.memory_space<vmem>>, vector<1x8x128xf32>,
    %c5 = arith.constant 5 : index
    %c0_121 = arith.constant 0 : index
    %c0_122 = arith.constant 0 : index
    %113 = vector.load %arg11[%c5, %c0_121, %c0_122] : memref<8x8x128xf32, #tpu.memory_space<vmem>>, vector<1x8x128xf32>
    %114 = vector.shape_cast %113 : vector<1x8x128xf32> to vector<8x128xf32>
    %c0_123 = arith.constant 0 : index
    %c0_124 = arith.constant 0 : index
    %115 = vector.load %arg13[%c0_123, %c0_124] : memref<8x128xf32, #tpu.memory_space<vmem>>, vector<8x128xf32>
    %c0_125 = arith.constant 0 : index
    %c0_126 = arith.constant 0 : index
    %116 = vector.load %arg3[%c0_125, %c0_126] : memref<128x128xf32, #tpu.memory_space<vmem>>, vector<128x128xf32>
    %cst_127 = arith.constant dense<0.000000e+00> : vector<8x128xf32>
    %117 = tpu.matmul %115, %116, %cst_127 {dimension_numbers = #tpu.dot_dimension_numbers<[1], [0], [0], [1], [0, 0, 1, 1], [], []>} : vector<8x128xf32>, vector<128x128xf32>, vector<8x128xf32> -> vector<8x128xf32>
    %118 = arith.addf %114, %117 : vector<8x128xf32>
    %119 = math.tanh %118 : vector<8x128xf32>
    %c0_128 = arith.constant 0 : index
    %c0_129 = arith.constant 0 : index
    %120 = vector.load %arg14[%c0_128, %c0_129] : memref<8x128xf32, #tpu.memory_space<vmem>>, vector<8x128xf32>
    %121 = tpu.concatenate %119, %120 in 1 : vector<8x128xf32>, vector<8x128xf32> -> vector<8x256xf32>
    %c0_130 = arith.constant 0 : index
    %c0_131 = arith.constant 0 : index
    %122 = vector.load %arg5[%c0_130, %c0_131] : memref<256x128xf32, #tpu.memory_space<vmem>>, vector<256x128xf32>
    %cst_132 = arith.constant dense<0.000000e+00> : vector<8x128xf32>
    %123 = tpu.matmul %121, %122, %cst_132 {dimension_numbers = #tpu.dot_dimension_numbers<[1], [0], [0], [1], [0, 0, 1, 1], [], []>} : vector<8x256xf32>, vector<256x128xf32>, vector<8x128xf32> -> vector<8x128xf32>
    %c0_133 = arith.constant 0 : index
    %c0_134 = arith.constant 0 : index
    %124 = vector.load %arg6[%c0_133, %c0_134] : memref<1x128xf32, #tpu.memory_space<vmem>>, vector<1x128xf32>
    %125 = vector.broadcast %124 : vector<1x128xf32> to vector<8x128xf32>
    %126 = arith.addf %123, %125 : vector<8x128xf32>
    %127 = math.tanh %126 : vector<8x128xf32>
    %c0_135 = arith.constant 0 : index
    %c0_136 = arith.constant 0 : index
    %128 = vector.load %arg13[%c0_135, %c0_136] : memref<8x128xf32, #tpu.memory_space<vmem>>, vector<8x128xf32>
    tpu.vector_store %arg13[%c0_135, %c0_136], %119 {strides = array<i32>} : memref<8x128xf32, #tpu.memory_space<vmem>>, vector<8x128xf32>,
    %c0_137 = arith.constant 0 : index
    %c0_138 = arith.constant 0 : index
    %129 = vector.load %arg14[%c0_137, %c0_138] : memref<8x128xf32, #tpu.memory_space<vmem>>, vector<8x128xf32>
    tpu.vector_store %arg14[%c0_137, %c0_138], %127 {strides = array<i32>} : memref<8x128xf32, #tpu.memory_space<vmem>>, vector<8x128xf32>,
    %c5_139 = arith.constant 5 : index
    %c0_140 = arith.constant 0 : index
    %c0_141 = arith.constant 0 : index
    %130 = vector.load %arg12[%c5_139, %c0_140, %c0_141] : memref<8x8x128xf32, #tpu.memory_space<vmem>>, vector<1x8x128xf32>
    %131 = vector.shape_cast %130 : vector<1x8x128xf32> to vector<8x128xf32>
    %132 = vector.shape_cast %127 : vector<8x128xf32> to vector<1x8x128xf32>
    tpu.vector_store %arg12[%c5_139, %c0_140, %c0_141], %132 {strides = array<i32>} : memref<8x8x128xf32, #tpu.memory_space<vmem>>, vector<1x8x128xf32>,
    %c6 = arith.constant 6 : index
    %c0_142 = arith.constant 0 : index
    %c0_143 = arith.constant 0 : index
    %133 = vector.load %arg11[%c6, %c0_142, %c0_143] : memref<8x8x128xf32, #tpu.memory_space<vmem>>, vector<1x8x128xf32>
    %134 = vector.shape_cast %133 : vector<1x8x128xf32> to vector<8x128xf32>
    %c0_144 = arith.constant 0 : index
    %c0_145 = arith.constant 0 : index
    %135 = vector.load %arg13[%c0_144, %c0_145] : memref<8x128xf32, #tpu.memory_space<vmem>>, vector<8x128xf32>
    %c0_146 = arith.constant 0 : index
    %c0_147 = arith.constant 0 : index
    %136 = vector.load %arg3[%c0_146, %c0_147] : memref<128x128xf32, #tpu.memory_space<vmem>>, vector<128x128xf32>
    %cst_148 = arith.constant dense<0.000000e+00> : vector<8x128xf32>
    %137 = tpu.matmul %135, %136, %cst_148 {dimension_numbers = #tpu.dot_dimension_numbers<[1], [0], [0], [1], [0, 0, 1, 1], [], []>} : vector<8x128xf32>, vector<128x128xf32>, vector<8x128xf32> -> vector<8x128xf32>
    %138 = arith.addf %134, %137 : vector<8x128xf32>
    %139 = math.tanh %138 : vector<8x128xf32>
    %c0_149 = arith.constant 0 : index
    %c0_150 = arith.constant 0 : index
    %140 = vector.load %arg14[%c0_149, %c0_150] : memref<8x128xf32, #tpu.memory_space<vmem>>, vector<8x128xf32>
    %141 = tpu.concatenate %139, %140 in 1 : vector<8x128xf32>, vector<8x128xf32> -> vector<8x256xf32>
    %c0_151 = arith.constant 0 : index
    %c0_152 = arith.constant 0 : index
    %142 = vector.load %arg5[%c0_151, %c0_152] : memref<256x128xf32, #tpu.memory_space<vmem>>, vector<256x128xf32>
    %cst_153 = arith.constant dense<0.000000e+00> : vector<8x128xf32>
    %143 = tpu.matmul %141, %142, %cst_153 {dimension_numbers = #tpu.dot_dimension_numbers<[1], [0], [0], [1], [0, 0, 1, 1], [], []>} : vector<8x256xf32>, vector<256x128xf32>, vector<8x128xf32> -> vector<8x128xf32>
    %c0_154 = arith.constant 0 : index
    %c0_155 = arith.constant 0 : index
    %144 = vector.load %arg6[%c0_154, %c0_155] : memref<1x128xf32, #tpu.memory_space<vmem>>, vector<1x128xf32>
    %145 = vector.broadcast %144 : vector<1x128xf32> to vector<8x128xf32>
    %146 = arith.addf %143, %145 : vector<8x128xf32>
    %147 = math.tanh %146 : vector<8x128xf32>
    %c0_156 = arith.constant 0 : index
    %c0_157 = arith.constant 0 : index
    %148 = vector.load %arg13[%c0_156, %c0_157] : memref<8x128xf32, #tpu.memory_space<vmem>>, vector<8x128xf32>
    tpu.vector_store %arg13[%c0_156, %c0_157], %139 {strides = array<i32>} : memref<8x128xf32, #tpu.memory_space<vmem>>, vector<8x128xf32>,
    %c0_158 = arith.constant 0 : index
    %c0_159 = arith.constant 0 : index
    %149 = vector.load %arg14[%c0_158, %c0_159] : memref<8x128xf32, #tpu.memory_space<vmem>>, vector<8x128xf32>
    tpu.vector_store %arg14[%c0_158, %c0_159], %147 {strides = array<i32>} : memref<8x128xf32, #tpu.memory_space<vmem>>, vector<8x128xf32>,
    %c6_160 = arith.constant 6 : index
    %c0_161 = arith.constant 0 : index
    %c0_162 = arith.constant 0 : index
    %150 = vector.load %arg12[%c6_160, %c0_161, %c0_162] : memref<8x8x128xf32, #tpu.memory_space<vmem>>, vector<1x8x128xf32>
    %151 = vector.shape_cast %150 : vector<1x8x128xf32> to vector<8x128xf32>
    %152 = vector.shape_cast %147 : vector<8x128xf32> to vector<1x8x128xf32>
    tpu.vector_store %arg12[%c6_160, %c0_161, %c0_162], %152 {strides = array<i32>} : memref<8x8x128xf32, #tpu.memory_space<vmem>>, vector<1x8x128xf32>,
    %c7 = arith.constant 7 : index
    %c0_163 = arith.constant 0 : index
    %c0_164 = arith.constant 0 : index
    %153 = vector.load %arg11[%c7, %c0_163, %c0_164] : memref<8x8x128xf32, #tpu.memory_space<vmem>>, vector<1x8x128xf32>
    %154 = vector.shape_cast %153 : vector<1x8x128xf32> to vector<8x128xf32>
    %c0_165 = arith.constant 0 : index
    %c0_166 = arith.constant 0 : index
    %155 = vector.load %arg13[%c0_165, %c0_166] : memref<8x128xf32, #tpu.memory_space<vmem>>, vector<8x128xf32>
    %c0_167 = arith.constant 0 : index
    %c0_168 = arith.constant 0 : index
    %156 = vector.load %arg3[%c0_167, %c0_168] : memref<128x128xf32, #tpu.memory_space<vmem>>, vector<128x128xf32>
    %cst_169 = arith.constant dense<0.000000e+00> : vector<8x128xf32>
    %157 = tpu.matmul %155, %156, %cst_169 {dimension_numbers = #tpu.dot_dimension_numbers<[1], [0], [0], [1], [0, 0, 1, 1], [], []>} : vector<8x128xf32>, vector<128x128xf32>, vector<8x128xf32> -> vector<8x128xf32>
    %158 = arith.addf %154, %157 : vector<8x128xf32>
    %159 = math.tanh %158 : vector<8x128xf32>
    %c0_170 = arith.constant 0 : index
    %c0_171 = arith.constant 0 : index
    %160 = vector.load %arg14[%c0_170, %c0_171] : memref<8x128xf32, #tpu.memory_space<vmem>>, vector<8x128xf32>
    %161 = tpu.concatenate %159, %160 in 1 : vector<8x128xf32>, vector<8x128xf32> -> vector<8x256xf32>
    %c0_172 = arith.constant 0 : index
    %c0_173 = arith.constant 0 : index
    %162 = vector.load %arg5[%c0_172, %c0_173] : memref<256x128xf32, #tpu.memory_space<vmem>>, vector<256x128xf32>
    %cst_174 = arith.constant dense<0.000000e+00> : vector<8x128xf32>
    %163 = tpu.matmul %161, %162, %cst_174 {dimension_numbers = #tpu.dot_dimension_numbers<[1], [0], [0], [1], [0, 0, 1, 1], [], []>} : vector<8x256xf32>, vector<256x128xf32>, vector<8x128xf32> -> vector<8x128xf32>
    %c0_175 = arith.constant 0 : index
    %c0_176 = arith.constant 0 : index
    %164 = vector.load %arg6[%c0_175, %c0_176] : memref<1x128xf32, #tpu.memory_space<vmem>>, vector<1x128xf32>
    %165 = vector.broadcast %164 : vector<1x128xf32> to vector<8x128xf32>
    %166 = arith.addf %163, %165 : vector<8x128xf32>
    %167 = math.tanh %166 : vector<8x128xf32>
    %c0_177 = arith.constant 0 : index
    %c0_178 = arith.constant 0 : index
    %168 = vector.load %arg13[%c0_177, %c0_178] : memref<8x128xf32, #tpu.memory_space<vmem>>, vector<8x128xf32>
    tpu.vector_store %arg13[%c0_177, %c0_178], %159 {strides = array<i32>} : memref<8x128xf32, #tpu.memory_space<vmem>>, vector<8x128xf32>,
    %c0_179 = arith.constant 0 : index
    %c0_180 = arith.constant 0 : index
    %169 = vector.load %arg14[%c0_179, %c0_180] : memref<8x128xf32, #tpu.memory_space<vmem>>, vector<8x128xf32>
    tpu.vector_store %arg14[%c0_179, %c0_180], %167 {strides = array<i32>} : memref<8x128xf32, #tpu.memory_space<vmem>>, vector<8x128xf32>,
    %c7_181 = arith.constant 7 : index
    %c0_182 = arith.constant 0 : index
    %c0_183 = arith.constant 0 : index
    %170 = vector.load %arg12[%c7_181, %c0_182, %c0_183] : memref<8x8x128xf32, #tpu.memory_space<vmem>>, vector<1x8x128xf32>
    %171 = vector.shape_cast %170 : vector<1x8x128xf32> to vector<8x128xf32>
    %172 = vector.shape_cast %167 : vector<8x128xf32> to vector<1x8x128xf32>
    tpu.vector_store %arg12[%c7_181, %c0_182, %c0_183], %172 {strides = array<i32>} : memref<8x8x128xf32, #tpu.memory_space<vmem>>, vector<1x8x128xf32>,
    %c0_184 = arith.constant 0 : index
    %c0_185 = arith.constant 0 : index
    %c0_186 = arith.constant 0 : index
    %173 = vector.load %arg12[%c0_184, %c0_185, %c0_186] : memref<8x8x128xf32, #tpu.memory_space<vmem>>, vector<8x8x128xf32>
    %174 = vector.shape_cast %173 : vector<8x8x128xf32> to vector<64x128xf32>
    %c0_187 = arith.constant 0 : index
    %c0_188 = arith.constant 0 : index
    %175 = vector.load %arg7[%c0_187, %c0_188] : memref<128x128xf32, #tpu.memory_space<vmem>>, vector<128x128xf32>
    %cst_189 = arith.constant dense<0.000000e+00> : vector<64x128xf32>
    %176 = tpu.matmul %174, %175, %cst_189 {dimension_numbers = #tpu.dot_dimension_numbers<[1], [0], [0], [1], [0, 0, 1, 1], [], []>} : vector<64x128xf32>, vector<128x128xf32>, vector<64x128xf32> -> vector<64x128xf32>
    %c0_190 = arith.constant 0 : index
    %c0_191 = arith.constant 0 : index
    %177 = vector.load %arg8[%c0_190, %c0_191] : memref<1x128xf32, #tpu.memory_space<vmem>>, vector<1x128xf32>
    %178 = vector.broadcast %177 : vector<1x128xf32> to vector<64x128xf32>
    %179 = arith.addf %176, %178 : vector<64x128xf32>
    %180 = vector.shape_cast %179 : vector<64x128xf32> to vector<8x8x128xf32>
    %c0_192 = arith.constant 0 : index
    %c0_193 = arith.constant 0 : index
    %c0_194 = arith.constant 0 : index
    %181 = vector.load %arg9[%c0_192, %c0_193, %c0_194] : memref<8x8x128xf32, #tpu.memory_space<vmem>>, vector<8x8x128xf32>
    tpu.vector_store %arg9[%c0_192, %c0_193, %c0_194], %180 {strides = array<i32>} : memref<8x8x128xf32, #tpu.memory_space<vmem>>, vector<8x8x128xf32>,
    %c0_195 = arith.constant 0 : index
    %c0_196 = arith.constant 0 : index
    %182 = vector.load %arg13[%c0_195, %c0_196] : memref<8x128xf32, #tpu.memory_space<vmem>>, vector<8x128xf32>
    %c0_197 = arith.constant 0 : index
    %c0_198 = arith.constant 0 : index
    %c0_199 = arith.constant 0 : index
    %183 = vector.load %arg10[%c0_197, %c0_198, %c0_199] : memref<2x8x128xf32, #tpu.memory_space<vmem>>, vector<1x8x128xf32>
    %184 = vector.shape_cast %183 : vector<1x8x128xf32> to vector<8x128xf32>
    %185 = vector.shape_cast %182 : vector<8x128xf32> to vector<1x8x128xf32>
    tpu.vector_store %arg10[%c0_197, %c0_198, %c0_199], %185 {strides = array<i32>} : memref<2x8x128xf32, #tpu.memory_space<vmem>>, vector<1x8x128xf32>,
    %c0_200 = arith.constant 0 : index
    %c0_201 = arith.constant 0 : index
    %186 = vector.load %arg14[%c0_200, %c0_201] : memref<8x128xf32, #tpu.memory_space<vmem>>, vector<8x128xf32>
    %c1_202 = arith.constant 1 : index
    %c0_203 = arith.constant 0 : index
    %c0_204 = arith.constant 0 : index
    %187 = vector.load %arg10[%c1_202, %c0_203, %c0_204] : memref<2x8x128xf32, #tpu.memory_space<vmem>>, vector<1x8x128xf32>
    %188 = vector.shape_cast %187 : vector<1x8x128xf32> to vector<8x128xf32>
    %189 = vector.shape_cast %186 : vector<8x128xf32> to vector<1x8x128xf32>
    tpu.vector_store %arg10[%c1_202, %c0_203, %c0_204], %189 {strides = array<i32>} : memref<2x8x128xf32, #tpu.memory_space<vmem>>, vector<1x8x128xf32>,
    return
  }
  func.func @transform_0(%arg0: i32) -> (i32, i32, i32) {
    %c0_i32 = arith.constant 0 : i32
    %c0_i32_0 = arith.constant 0 : i32
    %c0_i32_1 = arith.constant 0 : i32
    %c0_i32_2 = arith.constant 0 : i32
    return %c0_i32, %c0_i32_0, %c0_i32_1 : i32, i32, i32
  }
  func.func @transform_1(%arg0: i32) -> (i32, i32) {
    %c0_i32 = arith.constant 0 : i32
    %c0_i32_0 = arith.constant 0 : i32
    %c0_i32_1 = arith.constant 0 : i32
    return %c0_i32, %c0_i32_0 : i32, i32
  }
  func.func @transform_2(%arg0: i32) -> (i32, i32) {
    %c0_i32 = arith.constant 0 : i32
    %c0_i32_0 = arith.constant 0 : i32
    %c0_i32_1 = arith.constant 0 : i32
    return %c0_i32, %c0_i32_0 : i32, i32
  }
  func.func @transform_3(%arg0: i32) -> (i32, i32) {
    %c0_i32 = arith.constant 0 : i32
    %c0_i32_0 = arith.constant 0 : i32
    %c0_i32_1 = arith.constant 0 : i32
    return %c0_i32, %c0_i32_0 : i32, i32
  }
  func.func @transform_4(%arg0: i32) -> (i32, i32) {
    %c0_i32 = arith.constant 0 : i32
    %c0_i32_0 = arith.constant 0 : i32
    %c0_i32_1 = arith.constant 0 : i32
    return %c0_i32, %c0_i32_0 : i32, i32
  }
  func.func @transform_5(%arg0: i32) -> (i32, i32) {
    %c0_i32 = arith.constant 0 : i32
    %c0_i32_0 = arith.constant 0 : i32
    %c0_i32_1 = arith.constant 0 : i32
    return %c0_i32, %c0_i32_0 : i32, i32
  }
  func.func @transform_6(%arg0: i32) -> (i32, i32) {
    %c0_i32 = arith.constant 0 : i32
    %c0_i32_0 = arith.constant 0 : i32
    %c0_i32_1 = arith.constant 0 : i32
    return %c0_i32, %c0_i32_0 : i32, i32
  }
  func.func @transform_7(%arg0: i32) -> (i32, i32) {
    %c0_i32 = arith.constant 0 : i32
    %c0_i32_0 = arith.constant 0 : i32
    %c0_i32_1 = arith.constant 0 : i32
    return %c0_i32, %c0_i32_0 : i32, i32
  }
  func.func @transform_8(%arg0: i32) -> (i32, i32, i32) {
    %c0_i32 = arith.constant 0 : i32
    %c0_i32_0 = arith.constant 0 : i32
    %c0_i32_1 = arith.constant 0 : i32
    %c0_i32_2 = arith.constant 0 : i32
    return %c0_i32, %c0_i32_0, %c0_i32_1 : i32, i32, i32
  }
  func.func @transform_9(%arg0: i32) -> (i32, i32, i32) {
    %c0_i32 = arith.constant 0 : i32
    %c0_i32_0 = arith.constant 0 : i32
    %c0_i32_1 = arith.constant 0 : i32
    %c0_i32_2 = arith.constant 0 : i32
    return %c0_i32, %c0_i32_0, %c0_i32_1 : i32, i32, i32
  }
}

</mosaic_0001>

<bundles_post_ra>
// kernel: tpu_custom_call.1
= control target key start
LH: loop header
LB: loop body
LE: loop exit
PB: predicated region body
PF: predicated region fallthrough
CT: control target
= control target key end

     0   :  { %15 = vsyncpa [#allocation7], 0  ;;  %s4018_s0 = inlined_call_operand.hbm [shape: f32[8,8,128], index: 0, kind: input, shape index: {}]   ;;  %s4019_s1 = inlined_call_operand.hbm [shape: f32[128,128], index: 1, kind: input, shape index: {}]   ;;  %s4020_s2 = inlined_call_operand.hbm [shape: f32[128,128], index: 2, kind: input, shape index: {}]   ;;  %s4021_s3 = inlined_call_operand.vmem [shape: f32[1,128], index: 3, kind: input, shape index: {}]   ;;  %s4022_s4 = inlined_call_operand.hbm [shape: f32[256,128], index: 4, kind: input, shape index: {}]   ;;  %s4023_s5 = inlined_call_operand.vmem [shape: f32[1,128], index: 5, kind: input, shape index: {}]   ;;  %s4024_s6 = inlined_call_operand.hbm [shape: f32[128,128], index: 6, kind: input, shape index: {}]   ;;  %s4025_s7 = inlined_call_operand.vmem [shape: f32[1,128], index: 7, kind: input, shape index: {}]   ;;  %s4026_s8 = inlined_call_operand.hbm [shape: f32[8,8,128], index: 8, kind: output, shape index: {0}]   ;;  %s4027_s9 = inlined_call_operand.hbm [shape: f32[2,8,128], index: 9, kind: output, shape index: {1}]  }
   0x1   :  { %16 = vsyncpa [#allocation10], 0 }
   0x2   :  { %17 = vsyncpa [#allocation13], 0 }
   0x3   :  { %18 = vsyncpa [#allocation8], 0 }
   0x4   :  { %19 = vsyncpa [#allocation17], 0  ;;  %s3113_s30 = smov [#allocation9]   ;;  %s3114_s11 = smov [#allocation12]  }
   0x5   :  { %s37_s10 = sshll.u32 %s3113_s30, 4  ;;  %s63_s12 = sshll.u32 %s3114_s11, 4  ;;  %s38_s10 = int_to_ptr.vmem [resolvable:$true] %s37_s10  ;;  %s64_s12 = int_to_ptr.vmem [resolvable:$true] %s63_s12 }
   0x6   :  { %s2971_s13 = scalar_lea.vmem %s38_s10, 2048  ;;  %p2976_p1 = scmp.lt.s32.totalorder %s38_s10, %s38_s10 }
   0x7   :  { %p2972_p0 = scmp.ne.s32.totalorder %s38_s10, %s2971_s13  ;;  %p2977_p2 = scmp.lt.s32.totalorder %s2971_s13, %s2971_s13 }
   0x9   :  { %p2978_p3 = por %p2977_p2, %p2976_p1 }
   0xb   :  { %p2979_p4 = pnand %p2978_p3, %p2972_p0 }
   0xd   :  { %2982 = shalt.err (!%p2979_p4)
}
   0xe   :  { %s3115_s14 = smov 128   ;;  %s3116_s15 = smov 8  }
   0xf   :  { %43 = dma.hbm_to_vmem [thread:$0]  %s4019_s1, 2048, %s38_s10, [#allocation10], %s3115_s14, %s3115_s14, %s3116_s15  }
  0x10   :  { %s2991_s18 = scalar_lea.vmem %s64_s12, 4096  ;;  %p2996_p6 = scmp.lt.s32.totalorder %s64_s12, %s64_s12 }
  0x11   :  { %p2992_p5 = scmp.ne.s32.totalorder %s64_s12, %s2991_s18  ;;  %p2997_p7 = scmp.lt.s32.totalorder %s2991_s18, %s2991_s18 }
  0x13   :  { %p2998_p8 = por %p2997_p7, %p2996_p6 }
  0x15   :  { %p2999_p9 = pnand %p2998_p8, %p2992_p5 }
  0x17   :  { %3002 = shalt.err (!%p2999_p9)
}
  0x18   :  { %69 = dma.hbm_to_vmem [thread:$0]  %s4022_s4, 4096, %s64_s12, [#allocation13], %s3115_s14, %s3115_s14, %s3116_s15  }
  0x19   :  { %s3117_s21 = smov [#allocation6]   ;;  %s3118_s23 = smov [#allocation11]  }
  0x1a   :  { %s25_s22 = sshll.u32 %s3117_s21, 4  ;;  %s49_s24 = sshll.u32 %s3118_s23, 4  ;;  %s26_s22 = int_to_ptr.vmem [resolvable:$true] %s25_s22  ;;  %s50_s24 = int_to_ptr.vmem [resolvable:$true] %s49_s24 }
  0x1b   :  { %s3011_s1 = scalar_lea.vmem %s26_s22, 1024  ;;  %p3016_p11 = scmp.lt.s32.totalorder %s26_s22, %s26_s22 }
  0x1c   :  { %p3012_p10 = scmp.ne.s32.totalorder %s26_s22, %s3011_s1  ;;  %p3017_p12 = scmp.lt.s32.totalorder %s3011_s1, %s3011_s1 }
  0x1e   :  { %p3018_p13 = por %p3017_p12, %p3016_p11 }
  0x20   :  { %p3019_p0 = pnand %p3018_p13, %p3012_p10 }
  0x22   :  { %3022 = shalt.err (!%p3019_p0)
}
  0x23   :  { %31 = dma.hbm_to_vmem [thread:$0]  %s4018_s0, 1024, %s26_s22, [#allocation7], %s3115_s14, %s3115_s14, %s3116_s15  }
  0x24   :  { %s3031_s4 = scalar_lea.vmem %s50_s24, 2048  ;;  %p3036_p2 = scmp.lt.s32.totalorder %s50_s24, %s50_s24 }
  0x25   :  { %p3032_p1 = scmp.ne.s32.totalorder %s50_s24, %s3031_s4  ;;  %p3037_p3 = scmp.lt.s32.totalorder %s3031_s4, %s3031_s4 }
  0x27   :  { %p3038_p4 = por %p3037_p3, %p3036_p2 }
  0x29   :  { %p3039_p5 = pnand %p3038_p4, %p3032_p1 }
  0x2b   :  { %3042 = shalt.err (!%p3039_p5)
}
  0x2c   :  { %55 = dma.hbm_to_vmem [thread:$0]  %s4020_s2, 2048, %s50_s24, [#allocation10], %s3115_s14, %s3115_s14, %s3116_s15  }
  0x2d   :  { %s3119_s29 = smov [#allocation14]  }
  0x2e   :  { %s77_s30 = sshll.u32 %s3119_s29, 4  ;;  %s78_s30 = int_to_ptr.vmem [resolvable:$true] %s77_s30 }
  0x2f   :  { %s3051_s10 = scalar_lea.vmem %s78_s30, 2048  ;;  %p3056_p7 = scmp.lt.s32.totalorder %s78_s30, %s78_s30 }
  0x30   :  { %p3052_p6 = scmp.ne.s32.totalorder %s78_s30, %s3051_s10  ;;  %p3057_p8 = scmp.lt.s32.totalorder %s3051_s10, %s3051_s10 }
  0x32   :  { %p3058_p9 = por %p3057_p8, %p3056_p7 }
  0x34   :  { %p3059_p10 = pnand %p3058_p9, %p3052_p6 }
  0x36   :  { %3062 = shalt.err (!%p3059_p10)
}
  0x37   :  { %83 = dma.hbm_to_vmem [thread:$0]  %s4024_s6, 2048, %s78_s30, [#allocation13], %s3115_s14, %s3115_s14, %s3116_s15  }
  0x38   :  { %3103 = dma.done.wait [#allocation7], 1024  }
  0x39   :  { %3104 = vsyncadd [#allocation7], 4294966272 }
  0x3a   :  { %3105 = dma.done.wait [#allocation10], 4096  }
  0x3b   :  { %3106 = vsyncadd [#allocation10], 4294963200 }
  0x3c   :  { %3107 = dma.done.wait [#allocation13], 6144  }
  0x3d   :  { %3108 = vsyncadd [#allocation13], 4294961152  ;;  %v4028_v0 = vmov 0.0   ;;  %vm3121_vm0 = vmmov 0   ;;  %v124_v1 = vld [vmem:[#allocation9 + $0x78] sm:$0xff]  ;;  %v123_v2 = vld [vmem:[#allocation9 + $0x70] sm:$0xff] }
  0x3e   :  { %2595 = vmatprep.subr.mxu1 %v4028_v0  ;;  %2627 = vmatprep.mubr.msk.f32.mxu1 %vm3121_vm0, %v4028_v0  ;;  %v3207_v3 = vld [vmem:[#allocation11 + $0x78] sm:$0xff]  ;;  %v3210_v4 = vld [vmem:[#allocation11 + $0x70] sm:$0xff]  ;;  %v122_v5 = vld [vmem:[#allocation9 + $0x68] sm:$0xff] }
  0x3f   :  { %2551 = vmatprep.subr.mxu0 %v124_v1  ;;  %2596 = vmatpush3.msra.mxu1 %v3207_v3  ;;  %v3213_v6 = vld [vmem:[#allocation11 + $0x68] sm:$0xff]  ;;  %v121_v7 = vld [vmem:[#allocation9 + $0x60] sm:$0xff]  ;;  %v120_v9 = vld [vmem:[#allocation9 + $0x58] sm:$0xff] }
  0x40   :  { %2552 = vmatpush3.msra.mxu0 %v124_v1  ;;  %2597 = vmatprep.subr.mxu1 %v4028_v0  ;;  %v3217_v8 = vld [vmem:[#allocation11 + $0x60] sm:$0xff]  ;;  %v3221_v10 = vld [vmem:[#allocation11 + $0x58] sm:$0xff]  ;;  %v119_v11 = vld [vmem:[#allocation9 + $0x50] sm:$0xff] }
  0x41   :  { %2553 = vmatprep.subr.mxu0 %v123_v2  ;;  %2598 = vmatpush3.msra.mxu1 %v3210_v4  ;;  %v3225_v12 = vld [vmem:[#allocation11 + $0x50] sm:$0xff]  ;;  %v118_v13 = vld [vmem:[#allocation9 + $0x48] sm:$0xff]  ;;  %v117_v15 = vld [vmem:[#allocation9 + $0x40] sm:$0xff] }
  0x42   :  { %2554 = vmatpush3.msra.mxu0 %v123_v2  ;;  %2599 = vmatprep.subr.mxu1 %v4028_v0  ;;  %v3229_v14 = vld [vmem:[#allocation11 + $0x48] sm:$0xff]  ;;  %v3233_v16 = vld [vmem:[#allocation11 + $0x40] sm:$0xff]  ;;  %v116_v17 = vld [vmem:[#allocation9 + $0x38] sm:$0xff] }
  0x43   :  { %2555 = vmatprep.subr.mxu0 %v122_v5  ;;  %2600 = vmatpush3.msra.mxu1 %v3213_v6  ;;  %v3237_v18 = vld [vmem:[#allocation11 + $0x38] sm:$0xff]  ;;  %v115_v19 = vld [vmem:[#allocation9 + $0x30] sm:$0xff]  ;;  %v114_v21 = vld [vmem:[#allocation9 + $0x28] sm:$0xff] }
  0x44   :  { %2556 = vmatpush3.msra.mxu0 %v122_v5  ;;  %2601 = vmatprep.subr.mxu1 %v4028_v0  ;;  %v3241_v20 = vld [vmem:[#allocation11 + $0x30] sm:$0xff]  ;;  %v3245_v22 = vld [vmem:[#allocation11 + $0x28] sm:$0xff]  ;;  %v113_v23 = vld [vmem:[#allocation9 + $0x20] sm:$0xff] }
  0x45   :  { %2557 = vmatprep.subr.mxu0 %v121_v7  ;;  %2602 = vmatpush3.msra.mxu1 %v3217_v8  ;;  %v3249_v24 = vld [vmem:[#allocation11 + $0x20] sm:$0xff]  ;;  %v112_v25 = vld [vmem:[#allocation9 + $0x18] sm:$0xff]  ;;  %v111_v27 = vld [vmem:[#allocation9 + $0x10] sm:$0xff] }
  0x46   :  { %2558 = vmatpush3.msra.mxu0 %v121_v7  ;;  %2603 = vmatprep.subr.mxu1 %v4028_v0  ;;  %v3253_v26 = vld [vmem:[#allocation11 + $0x18] sm:$0xff]  ;;  %v3257_v28 = vld [vmem:[#allocation11 + $0x10] sm:$0xff]  ;;  %v110_v29 = vld [vmem:[#allocation9 + $0x8] sm:$0xff] }
  0x47   :  { %2559 = vmatprep.subr.mxu0 %v120_v9  ;;  %2604 = vmatpush3.msra.mxu1 %v3221_v10  ;;  %v101_v30 = vld [vmem:[#allocation6] sm:$0xff]  ;;  %v3262_v31 = vld [vmem:[#allocation11 + $0x8] sm:$0xff]  ;;  %v3269_v35 = vld [vmem:[#allocation12 + $0xf8] sm:$0xff] }
  0x48   :  { %2560 = vmatpush3.msra.mxu0 %v120_v9  ;;  %2605 = vmatprep.subr.mxu1 %v4028_v0  ;;  %v109_v32 = vld [vmem:[#allocation9] sm:$0xff]  ;;  %v102_v34 = vld [vmem:[#allocation6 + $0x8] sm:$0xff]  ;;  %v3272_v36 = vld [vmem:[#allocation12 + $0x78] sm:$0xff] }
  0x49   :  { %2561 = vmatprep.subr.mxu0 %v119_v11  ;;  %2606 = vmatpush3.msra.mxu1 %v3225_v12  ;;  %v3265_v33 = vld [vmem:[#allocation11] sm:$0xff]  ;;  %v3275_v37 = vld [vmem:[#allocation12 + $0xf0] sm:$0xff]  ;;  %v3283_v39 = vld [vmem:[#allocation12 + $0xe8] sm:$0xff] }
  0x4a   :  { %2562 = vmatpush3.msra.mxu0 %v119_v11  ;;  %2607 = vmatprep.subr.mxu1 %v4028_v0  ;;  %v3279_v38 = vld [vmem:[#allocation12 + $0x70] sm:$0xff]  ;;  %v3287_v40 = vld [vmem:[#allocation12 + $0x68] sm:$0xff]  ;;  %v3291_v41 = vld [vmem:[#allocation12 + $0xe0] sm:$0xff] }
  0x4b   :  { %2563 = vmatprep.subr.mxu0 %v118_v13  ;;  %2608 = vmatpush3.msra.mxu1 %v3229_v14  ;;  %v3295_v42 = vld [vmem:[#allocation12 + $0x60] sm:$0xff]  ;;  %v3299_v43 = vld [vmem:[#allocation12 + $0xd8] sm:$0xff]  ;;  %v3307_v45 = vld [vmem:[#allocation12 + $0xd0] sm:$0xff] }
  0x4c   :  { %2564 = vmatpush3.msra.mxu0 %v118_v13  ;;  %2609 = vmatprep.subr.mxu1 %v4028_v0  ;;  %v3303_v44 = vld [vmem:[#allocation12 + $0x58] sm:$0xff]  ;;  %v3339_v46 = vld [vmem:[#allocation12 + $0x50] sm:$0xff]  ;;  %v3342_v47 = vld [vmem:[#allocation12 + $0xc8] sm:$0xff] }
  0x4d   :  { %2565 = vmatprep.subr.mxu0 %v117_v15  ;;  %2610 = vmatpush3.msra.mxu1 %v3233_v16  ;;  %v3345_v48 = vld [vmem:[#allocation12 + $0x48] sm:$0xff]  ;;  %v3348_v49 = vld [vmem:[#allocation12 + $0xc0] sm:$0xff]  ;;  %v3354_v51 = vld [vmem:[#allocation12 + $0xb8] sm:$0xff] }
  0x4e   :  { %2566 = vmatpush3.msra.mxu0 %v117_v15  ;;  %2611 = vmatprep.subr.mxu1 %v4028_v0  ;;  %v3351_v50 = vld [vmem:[#allocation12 + $0x40] sm:$0xff]  ;;  %v103_v52 = vld [vmem:[#allocation6 + $0x10] sm:$0xff]  ;;  %v3357_v53 = vld [vmem:[#allocation12 + $0x38] sm:$0xff] }
  0x4f   :  { %2567 = vmatprep.subr.mxu0 %v116_v17  ;;  %2612 = vmatpush3.msra.mxu1 %v3237_v18  ;;  %v104_v54 = vld [vmem:[#allocation6 + $0x18] sm:$0xff]  ;;  %v3360_v55 = vld [vmem:[#allocation12 + $0xb0] sm:$0xff]  ;;  %v3365_v57 = vld [vmem:[#allocation12 + $0xa8] sm:$0xff] }
  0x50   :  { %2568 = vmatpush3.msra.mxu0 %v116_v17  ;;  %2613 = vmatprep.subr.mxu1 %v4028_v0  ;;  %v3363_v56 = vld [vmem:[#allocation12 + $0x30] sm:$0xff]  ;;  %v105_v58 = vld [vmem:[#allocation6 + $0x20] sm:$0xff]  ;;  %v3368_v59 = vld [vmem:[#allocation12 + $0x28] sm:$0xff] }
  0x51   :  { %2569 = vmatprep.subr.mxu0 %v115_v19  ;;  %2614 = vmatpush3.msra.mxu1 %v3241_v20  ;;  %v106_v60 = vld [vmem:[#allocation6 + $0x28] sm:$0xff]  ;;  %v3370_v61 = vld [vmem:[#allocation12 + $0xa0] sm:$0xff]  ;;  %v107_v63 = vld [vmem:[#allocation6 + $0x30] sm:$0xff] }
  0x52   :  { %2570 = vmatpush3.msra.mxu0 %v115_v19  ;;  %2615 = vmatprep.subr.mxu1 %v4028_v0  ;;  %v3373_v62 = vld [vmem:[#allocation12 + $0x20] sm:$0xff]  ;;  %v3376_v1 = vld [vmem:[#allocation12 + $0x98] sm:$0xff]  ;;  %v3382_v7 = vld [vmem:[#allocation12 + $0x90] sm:$0xff] }
  0x53   :  { %2571 = vmatprep.subr.mxu0 %v114_v21  ;;  %2616 = vmatpush3.msra.mxu1 %v3245_v22  ;;  %v3379_v2 = vld [vmem:[#allocation12 + $0x18] sm:$0xff]  ;;  %v3385_v9 = vld [vmem:[#allocation12 + $0x10] sm:$0xff]  ;;  %v3388_v11 = vld [vmem:[#allocation12 + $0x88] sm:$0xff] }
  0x54   :  { %2572 = vmatpush3.msra.mxu0 %v114_v21  ;;  %2617 = vmatprep.subr.mxu1 %v4028_v0  ;;  %v108_v5 = vld [vmem:[#allocation6 + $0x38] sm:$0xff]  ;;  %v3391_v13 = vld [vmem:[#allocation12 + $0x8] sm:$0xff]  ;;  %v3394_v15 = vld [vmem:[#allocation12 + $0x80] sm:$0xff] }
  0x55   :  { %2573 = vmatprep.subr.mxu0 %v113_v23  ;;  %2618 = vmatpush3.msra.mxu1 %v3249_v24  ;;  %v3398_v17 = vld [vmem:[#allocation12] sm:$0xff] }
  0x56   :  { %2574 = vmatpush3.msra.mxu0 %v113_v23  ;;  %2619 = vmatprep.subr.mxu1 %v4028_v0  ;;  %v3409_v23 = vld [vmem:[%s4021_s3] ss:$0 sm:$0xff] }
  0x57   :  { %2575 = vmatprep.subr.mxu0 %v112_v25  ;;  %2620 = vmatpush3.msra.mxu1 %v3253_v26 }
  0x58   :  { %2576 = vmatpush3.msra.mxu0 %v112_v25  ;;  %2621 = vmatprep.subr.mxu1 %v4028_v0 }
  0x59   :  { %2577 = vmatprep.subr.mxu0 %v111_v27  ;;  %2622 = vmatpush3.msra.mxu1 %v3257_v28 }
  0x5a   :  { %2578 = vmatpush3.msra.mxu0 %v111_v27  ;;  %2623 = vmatprep.subr.mxu1 %v4028_v0 }
  0x5b   :  { %2579 = vmatprep.subr.mxu0 %v110_v29  ;;  %2583 = vmatprep.mubr.f32.mxu0 %v101_v30 }
  0x5c   :  { %2580 = vmatpush3.msra.mxu0 %v110_v29  ;;  %2624 = vmatpush3.msra.mxu1 %v3262_v31 }
  0x5d   :  { %2581 = vmatprep.subr.mxu0 %v109_v32  ;;  %2625 = vmatprep.subr.mxu1 %v4028_v0 }
  0x5e   :  { %2582 = vmatpush3.msra.mxu0 %v109_v32  ;;  %2626 = vmatpush3.msra.mxu1 %v3265_v33 }
  0x5f   :  { %2584 = vmatmul.mubr.f32.vlgmr.msra.gmra.mxu0 %v102_v34  ;;  %2628 = vmatmul.mubr.f32.vlgmr.msra.gmra.mxu1 %v4028_v0 }
  0x60   :  { %2128 = vmatprep.subr.mxu0 %v3269_v35  ;;  %2630 = vmatprep.subr.mxu1 %v4028_v0 }
  0x61   :  { %2129 = vmatpush3.msra.mxu0 %v3272_v36  ;;  %2631 = vmatpush3.msra.mxu1 %v3207_v3 }
  0x62   :  { %2130 = vmatprep.subr.mxu0 %v3275_v37  ;;  %2632 = vmatprep.subr.mxu1 %v4028_v0 }
  0x63   :  { %2131 = vmatpush3.msra.mxu0 %v3279_v38  ;;  %2633 = vmatpush3.msra.mxu1 %v3210_v4 }
  0x64   :  { %2132 = vmatprep.subr.mxu0 %v3283_v39  ;;  %2634 = vmatprep.subr.mxu1 %v4028_v0 }
  0x65   :  { %2133 = vmatpush3.msra.mxu0 %v3287_v40  ;;  %2635 = vmatpush3.msra.mxu1 %v3213_v6 }
  0x66   :  { %2134 = vmatprep.subr.mxu0 %v3291_v41  ;;  %2636 = vmatprep.subr.mxu1 %v4028_v0 }
  0x67   :  { %2135 = vmatpush3.msra.mxu0 %v3295_v42  ;;  %2637 = vmatpush3.msra.mxu1 %v3217_v8 }
  0x68   :  { %2136 = vmatprep.subr.mxu0 %v3299_v43  ;;  %2638 = vmatprep.subr.mxu1 %v4028_v0 }
  0x69   :  { %2137 = vmatpush3.msra.mxu0 %v3303_v44  ;;  %2639 = vmatpush3.msra.mxu1 %v3221_v10 }
  0x6a   :  { %2138 = vmatprep.subr.mxu0 %v3307_v45  ;;  %2640 = vmatprep.subr.mxu1 %v4028_v0 }
  0x6b   :  { %2641 = vmatpush3.msra.mxu1 %v3225_v12  ;;  %2662 = vmatprep.mubr.msk.f32.mxu1 %vm3121_vm0, %v4028_v0 }
  0x6c   :  { %2642 = vmatprep.subr.mxu1 %v4028_v0  ;;  %2139 = vmatpush3.msra.mxu0 %v3339_v46 }
  0x6d   :  { %2643 = vmatpush3.msra.mxu1 %v3229_v14  ;;  %2140 = vmatprep.subr.mxu0 %v3342_v47 }
  0x6e   :  { %2644 = vmatprep.subr.mxu1 %v4028_v0  ;;  %2141 = vmatpush3.msra.mxu0 %v3345_v48 }
  0x6f   :  { %2645 = vmatpush3.msra.mxu1 %v3233_v16  ;;  %2142 = vmatprep.subr.mxu0 %v3348_v49 }
  0x70   :  { %2646 = vmatprep.subr.mxu1 %v4028_v0  ;;  %2143 = vmatpush3.msra.mxu0 %v3351_v50 }
  0x71   :  { %2647 = vmatpush3.msra.mxu1 %v3237_v18  ;;  %2144 = vmatprep.subr.mxu0 %v3354_v51 }
  0x72   :  { %2648 = vmatprep.subr.mxu1 %v4028_v0  ;;  %2586 = vmatprep.mubr.f32.mxu0 %v103_v52 }
  0x73   :  { %2649 = vmatpush3.msra.mxu1 %v3241_v20  ;;  %2145 = vmatpush3.msra.mxu0 %v3357_v53 }
  0x74   :  { %2650 = vmatprep.subr.mxu1 %v4028_v0  ;;  %2587 = vmatmul.mubr.f32.gmra.mxu0 %v104_v54 }
  0x75   :  { %2651 = vmatpush3.msra.mxu1 %v3245_v22  ;;  %2146 = vmatprep.subr.mxu0 %v3360_v55 }
  0x76   :  { %2652 = vmatprep.subr.mxu1 %v4028_v0  ;;  %2147 = vmatpush3.msra.mxu0 %v3363_v56 }
  0x77   :  { %2653 = vmatpush3.msra.mxu1 %v3249_v24  ;;  %2589 = vmatprep.mubr.f32.mxu0 %v105_v58 }
  0x78   :  { %2654 = vmatprep.subr.mxu1 %v4028_v0  ;;  %2148 = vmatprep.subr.mxu0 %v3365_v57 }
  0x79   :  { %2655 = vmatpush3.msra.mxu1 %v3253_v26  ;;  %2149 = vmatpush3.msra.mxu0 %v3368_v59 }
  0x7a   :  { %2656 = vmatprep.subr.mxu1 %v4028_v0  ;;  %2590 = vmatmul.mubr.f32.gmra.mxu0 %v106_v60 }
  0x7b   :  { %2657 = vmatpush3.msra.mxu1 %v3257_v28  ;;  %2150 = vmatprep.subr.mxu0 %v3370_v61 }
  0x7c   :  { %2658 = vmatprep.subr.mxu1 %v4028_v0  ;;  %2151 = vmatpush3.msra.mxu0 %v3373_v62 }
  0x7d   :  { %2659 = vmatpush3.msra.mxu1 %v3262_v31  ;;  %2592 = vmatprep.mubr.f32.mxu0 %v107_v63 }
  0x7e   :  { %2660 = vmatprep.subr.mxu1 %v4028_v0  ;;  %2152 = vmatprep.subr.mxu0 %v3376_v1 }
  0x7f   :  { %2661 = vmatpush3.msra.mxu1 %v3265_v33  ;;  %2153 = vmatpush3.msra.mxu0 %v3379_v2 }
  0x80   :  { %2665 = vmatprep.subr.mxu1 %v4028_v0  ;;  %2593 = vmatmul.mubr.f32.gmra.mxu0 %v108_v5 }
  0x81   :  { %2154 = vmatprep.subr.mxu0 %v3382_v7  ;;  %441 = vmatprep.mubr.f32.mxu0 %v4028_v0 }
  0x82   :  { %2155 = vmatpush3.msra.mxu0 %v3385_v9 }
  0x83   :  { %2156 = vmatprep.subr.mxu0 %v3388_v11 }
  0x84   :  { %2157 = vmatpush3.msra.mxu0 %v3391_v13 }
  0x85   :  { %2158 = vmatprep.subr.mxu0 %v3394_v15 }
  0x86   :  { %2159 = vmatpush3.msra.mxu0 %v3398_v17 }
  0x87   :  { %2180 = vmatprep.subr.mxu0 %v3269_v35 }
 0x11f   :  { %v3404_v19 = vpop.f32.mrf.mxu0  ;;  %v331_v21 = vpop.f32.mrf.mxu1 }
 0x120   :  { %v204_v5 = vadd.f32 %v3404_v19, %v3409_v23  ;;  %v4033_v19 = vmov 0.0  }
 0x121   :  { %v198_v25 = vpop.f32.mrf.mxu0  ;;  %v2629_v27 = vpop.f32.mrf.mxu1 }
 0x122   :  { %v199_v29 = vadd.f32 %v3409_v23, %v198_v25 }
 0x124   :  { %v335_v30 = vadd.f32 %v331_v21, %v199_v29  ;;  %v3495_v29 = vld [vmem:[%s4023_s5] ss:$0 sm:$0xff] }
 0x126   :  { %2930 = vtanh.f32 %v335_v30 }
 0x133   :  { %v2931_v32 = vpop.eup %2930 }
 0x134   :  { %442 = vmatmul.mubr.f32.vlgmr.msra.gmra.mxu0 %v2931_v32  ;;  %2663 = vmatmul.mubr.f32.vlgmr.msra.gmra.mxu1 %v2931_v32  ;;  %v3478_v34 = vpop.f32.mrf.mxu0 }
 0x135   :  { %2666 = vmatpush3.msra.mxu1 %v3207_v3  ;;  %2181 = vmatpush3.msra.mxu0 %v3272_v36 }
 0x136   :  { %2667 = vmatprep.subr.mxu1 %v4028_v0  ;;  %2182 = vmatprep.subr.mxu0 %v3275_v37  ;;  %v3480_v52 = vpop.f32.mrf.mxu0 }
 0x137   :  { %2668 = vmatpush3.msra.mxu1 %v3210_v4  ;;  %2183 = vmatpush3.msra.mxu0 %v3279_v38 }
 0x138   :  { %2669 = vmatprep.subr.mxu1 %v4028_v0  ;;  %2184 = vmatprep.subr.mxu0 %v3283_v39 }
 0x139   :  { %2670 = vmatpush3.msra.mxu1 %v3213_v6  ;;  %2185 = vmatpush3.msra.mxu0 %v3287_v40 }
 0x13a   :  { %2671 = vmatprep.subr.mxu1 %v4028_v0  ;;  %2186 = vmatprep.subr.mxu0 %v3291_v41  ;;  %v3482_v54 = vpop.f32.mrf.mxu0 }
 0x13b   :  { %2672 = vmatpush3.msra.mxu1 %v3217_v8  ;;  %2187 = vmatpush3.msra.mxu0 %v3295_v42  ;;  %4031 = vst [vmem:[#allocation23_spill] sm:$0xff] %v3482_v54 }
 0x13c   :  { %2673 = vmatprep.subr.mxu1 %v4028_v0  ;;  %2188 = vmatprep.subr.mxu0 %v3299_v43  ;;  %v3484_v58 = vpop.f32.mrf.mxu0 }
 0x13d   :  { %2674 = vmatpush3.msra.mxu1 %v3221_v10  ;;  %2189 = vmatpush3.msra.mxu0 %v3303_v44 }
 0x13e   :  { %2675 = vmatprep.subr.mxu1 %v4028_v0  ;;  %2190 = vmatprep.subr.mxu0 %v3307_v45 }
 0x13f   :  { %2676 = vmatpush3.msra.mxu1 %v3225_v12  ;;  %2191 = vmatpush3.msra.mxu0 %v3339_v46 }
 0x140   :  { %2677 = vmatprep.subr.mxu1 %v4028_v0  ;;  %2192 = vmatprep.subr.mxu0 %v3342_v47  ;;  %v3486_v60 = vpop.f32.mrf.mxu0 }
 0x141   :  { %2678 = vmatpush3.msra.mxu1 %v3229_v14  ;;  %2193 = vmatpush3.msra.mxu0 %v3345_v48  ;;  %4032 = vst [vmem:[#allocation24_spill] sm:$0xff] %v3486_v60 }
 0x142   :  { %2679 = vmatprep.subr.mxu1 %v4028_v0  ;;  %2194 = vmatprep.subr.mxu0 %v3348_v49  ;;  %v3488_v63 = vpop.f32.mrf.mxu0 }
 0x143   :  { %2680 = vmatpush3.msra.mxu1 %v3233_v16  ;;  %2195 = vmatpush3.msra.mxu0 %v3351_v50 }
 0x144   :  { %2681 = vmatprep.subr.mxu1 %v4028_v0  ;;  %2196 = vmatprep.subr.mxu0 %v3354_v51 }
 0x145   :  { %2682 = vmatpush3.msra.mxu1 %v3237_v18  ;;  %2197 = vmatpush3.msra.mxu0 %v3357_v53 }
 0x146   :  { %2683 = vmatprep.subr.mxu1 %v4028_v0  ;;  %2198 = vmatprep.subr.mxu0 %v3360_v55 }
 0x147   :  { %2684 = vmatpush3.msra.mxu1 %v3241_v20  ;;  %2199 = vmatpush3.msra.mxu0 %v3363_v56 }
 0x148   :  { %2685 = vmatprep.subr.mxu1 %v4028_v0  ;;  %2200 = vmatprep.subr.mxu0 %v3365_v57 }
 0x149   :  { %2686 = vmatpush3.msra.mxu1 %v3245_v22  ;;  %2201 = vmatpush3.msra.mxu0 %v3368_v59 }
 0x14a   :  { %2687 = vmatprep.subr.mxu1 %v4028_v0  ;;  %2202 = vmatprep.subr.mxu0 %v3370_v61 }
 0x14b   :  { %2688 = vmatpush3.msra.mxu1 %v3249_v24  ;;  %2203 = vmatpush3.msra.mxu0 %v3373_v62 }
 0x14c   :  { %2689 = vmatprep.subr.mxu1 %v4028_v0  ;;  %2204 = vmatprep.subr.mxu0 %v3376_v1 }
 0x14d   :  { %2690 = vmatpush3.msra.mxu1 %v3253_v26  ;;  %2205 = vmatpush3.msra.mxu0 %v3379_v2 }
 0x14e   :  { %2691 = vmatprep.subr.mxu1 %v4028_v0  ;;  %2206 = vmatprep.subr.mxu0 %v3382_v7 }
 0x14f   :  { %2692 = vmatpush3.msra.mxu1 %v3257_v28  ;;  %2697 = vmatprep.mubr.msk.f32.mxu1 %vm3121_vm0, %v4028_v0 }
 0x150   :  { %2693 = vmatprep.subr.mxu1 %v4028_v0  ;;  %2207 = vmatpush3.msra.mxu0 %v3385_v9 }
 0x151   :  { %2694 = vmatpush3.msra.mxu1 %v3262_v31  ;;  %2208 = vmatprep.subr.mxu0 %v3388_v11 }
 0x152   :  { %2695 = vmatprep.subr.mxu1 %v4028_v0  ;;  %2209 = vmatpush3.msra.mxu0 %v3391_v13 }
 0x153   :  { %2696 = vmatpush3.msra.mxu1 %v3265_v33  ;;  %2210 = vmatprep.subr.mxu0 %v3394_v15 }
 0x154   :  { %2211 = vmatpush3.msra.mxu0 %v3398_v17  ;;  %2700 = vmatprep.subr.mxu1 %v4028_v0 }
 0x155   :  { %2232 = vmatprep.subr.mxu0 %v3269_v35 }
 0x1f4   :  { %v2160_v21 = vpop.f32.mrf.mxu0  ;;  %v536_v25 = vpop.f32.mrf.mxu1 }
 0x1f5   :  { %v540_v27 = vadd.f32 %v536_v25, %v204_v5 }
 0x1f6   :  { %v2161_v30 = vpop.f32.mrf.mxu0  ;;  %v2664_v32 = vpop.f32.mrf.mxu1 }
 0x1f7   :  { %2932 = vtanh.f32 %v540_v27  ;;  %v2162_v0 = vadd.f32 %v2161_v30, %v2160_v21 }
 0x1f9   :  { %v444_v54 = vadd.f32 %v2162_v0, %v3495_v29  ;;  %v209_v0 = vadd.f32 %v3409_v23, %v3480_v52  ;;  %v3774_v52 = vld [vmem:[#allocation12 + $0xa0] sm:$0xff] }
 0x1fb   :  { %2934 = vtanh.f32 %v444_v54 }
 0x204   :  { %v2933_v60 = vpop.eup %2932 }
 0x205   :  { %2698 = vmatmul.mubr.f32.vlgmr.msra.gmra.mxu1 %v2933_v60 }
 0x206   :  { %2701 = vmatpush3.msra.mxu1 %v3207_v3  ;;  %2732 = vmatprep.mubr.msk.f32.mxu1 %vm3121_vm0, %v4033_v19 }
 0x207   :  { %2702 = vmatprep.subr.mxu1 %v4033_v19 }
 0x208   :  { %v3502_v5 = vpop.eup %2934  ;;  %2703 = vmatpush3.msra.mxu1 %v3210_v4 }
 0x209   :  { %4034 = vst [vmem:[#allocation25_spill] sm:$0xff] %v3502_v5  ;;  %646 = vmatprep.mubr.f32.mxu0 %v3502_v5  ;;  %2704 = vmatprep.subr.mxu1 %v4033_v19 }
 0x20a   :  { %647 = vmatmul.mubr.f32.vlgmr.msra.gmra.mxu0 %v2933_v60  ;;  %2705 = vmatpush3.msra.mxu1 %v3213_v6 }
 0x20b   :  { %2706 = vmatprep.subr.mxu1 %v4033_v19  ;;  %2233 = vmatpush3.msra.mxu0 %v3272_v36 }
 0x20c   :  { %2707 = vmatpush3.msra.mxu1 %v3217_v8  ;;  %2234 = vmatprep.subr.mxu0 %v3275_v37 }
 0x20d   :  { %2708 = vmatprep.subr.mxu1 %v4033_v19  ;;  %2235 = vmatpush3.msra.mxu0 %v3279_v38 }
 0x20e   :  { %2709 = vmatpush3.msra.mxu1 %v3221_v10  ;;  %2236 = vmatprep.subr.mxu0 %v3283_v39 }
 0x20f   :  { %2710 = vmatprep.subr.mxu1 %v4033_v19  ;;  %2237 = vmatpush3.msra.mxu0 %v3287_v40 }
 0x210   :  { %2711 = vmatpush3.msra.mxu1 %v3225_v12  ;;  %2238 = vmatprep.subr.mxu0 %v3291_v41 }
 0x211   :  { %2712 = vmatprep.subr.mxu1 %v4033_v19  ;;  %2239 = vmatpush3.msra.mxu0 %v3295_v42 }
 0x212   :  { %2713 = vmatpush3.msra.mxu1 %v3229_v14  ;;  %2240 = vmatprep.subr.mxu0 %v3299_v43 }
 0x213   :  { %2714 = vmatprep.subr.mxu1 %v4033_v19  ;;  %2241 = vmatpush3.msra.mxu0 %v3303_v44 }
 0x214   :  { %2715 = vmatpush3.msra.mxu1 %v3233_v16  ;;  %2242 = vmatprep.subr.mxu0 %v3307_v45 }
 0x215   :  { %2716 = vmatprep.subr.mxu1 %v4033_v19  ;;  %2243 = vmatpush3.msra.mxu0 %v3339_v46 }
 0x216   :  { %2717 = vmatpush3.msra.mxu1 %v3237_v18  ;;  %2244 = vmatprep.subr.mxu0 %v3342_v47 }
 0x217   :  { %2718 = vmatprep.subr.mxu1 %v4033_v19  ;;  %2245 = vmatpush3.msra.mxu0 %v3345_v48 }
 0x218   :  { %2719 = vmatpush3.msra.mxu1 %v3241_v20  ;;  %2246 = vmatprep.subr.mxu0 %v3348_v49 }
 0x219   :  { %2720 = vmatprep.subr.mxu1 %v4033_v19  ;;  %2247 = vmatpush3.msra.mxu0 %v3351_v50 }
 0x21a   :  { %2721 = vmatpush3.msra.mxu1 %v3245_v22  ;;  %2248 = vmatprep.subr.mxu0 %v3354_v51 }
 0x21b   :  { %2722 = vmatprep.subr.mxu1 %v4033_v19  ;;  %2249 = vmatpush3.msra.mxu0 %v3357_v53 }
 0x21c   :  { %2723 = vmatpush3.msra.mxu1 %v3249_v24  ;;  %2250 = vmatprep.subr.mxu0 %v3360_v55 }
 0x21d   :  { %2724 = vmatprep.subr.mxu1 %v4033_v19  ;;  %2251 = vmatpush3.msra.mxu0 %v3363_v56 }
 0x21e   :  { %2725 = vmatpush3.msra.mxu1 %v3253_v26  ;;  %2252 = vmatprep.subr.mxu0 %v3365_v57 }
 0x21f   :  { %2726 = vmatprep.subr.mxu1 %v4033_v19  ;;  %2253 = vmatpush3.msra.mxu0 %v3368_v59 }
 0x220   :  { %2727 = vmatpush3.msra.mxu1 %v3257_v28  ;;  %2254 = vmatprep.subr.mxu0 %v3370_v61 }
 0x221   :  { %2728 = vmatprep.subr.mxu1 %v4033_v19  ;;  %2255 = vmatpush3.msra.mxu0 %v3373_v62 }
 0x222   :  { %2729 = vmatpush3.msra.mxu1 %v3262_v31  ;;  %2256 = vmatprep.subr.mxu0 %v3376_v1 }
 0x223   :  { %2730 = vmatprep.subr.mxu1 %v4033_v19  ;;  %2257 = vmatpush3.msra.mxu0 %v3379_v2 }
 0x224   :  { %2731 = vmatpush3.msra.mxu1 %v3265_v33  ;;  %2258 = vmatprep.subr.mxu0 %v3382_v7 }
 0x225   :  { %2259 = vmatpush3.msra.mxu0 %v3385_v9  ;;  %2735 = vmatprep.subr.mxu1 %v4033_v19 }
 0x226   :  { %2260 = vmatprep.subr.mxu0 %v3388_v11 }
 0x227   :  { %2261 = vmatpush3.msra.mxu0 %v3391_v13 }
 0x228   :  { %2262 = vmatprep.subr.mxu0 %v3394_v15 }
 0x229   :  { %2263 = vmatpush3.msra.mxu0 %v3398_v17 }
 0x22a   :  { %2284 = vmatprep.subr.mxu0 %v3269_v35 }
 0x2c5   :  { %v742_v54 = vpop.f32.mrf.mxu1 }
 0x2c6   :  { %v746_v60 = vadd.f32 %v742_v54, %v209_v0  ;;  %v3780_v0 = vld [vmem:[#allocation12 + $0x98] sm:$0xff] }
 0x2c7   :  { %v2699_v21 = vpop.f32.mrf.mxu1  ;;  %v3783_v54 = vld [vmem:[#allocation12 + $0x18] sm:$0xff] }
 0x2c8   :  { %2936 = vtanh.f32 %v746_v60  ;;  %v3786_v60 = vld [vmem:[#allocation12 + $0x90] sm:$0xff] }
 0x2c9   :  { %v3789_v21 = vld [vmem:[#allocation12 + $0x10] sm:$0xff] }
 0x2ca   :  { %v2212_v25 = vpop.f32.mrf.mxu0 }
 0x2cc   :  { %v2213_v27 = vpop.f32.mrf.mxu0 }
 0x2cd   :  { %v2214_v30 = vadd.f32 %v2213_v27, %v2212_v25  ;;  %v3792_v25 = vld [vmem:[#allocation12 + $0x88] sm:$0xff] }
 0x2ce   :  { %v3795_v27 = vld [vmem:[#allocation12 + $0x8] sm:$0xff] }
 0x2cf   :  { %v649_v32 = vadd.f32 %v2214_v30, %v3495_v29  ;;  %v3798_v30 = vld [vmem:[#allocation12 + $0x80] sm:$0xff] }
 0x2d1   :  { %2938 = vtanh.f32 %v649_v32  ;;  %v3801_v32 = vld [vmem:[#allocation12] sm:$0xff] }
 0x2d5   :  { %v2937_v5 = vpop.eup %2936 }
 0x2d6   :  { %2733 = vmatmul.mubr.f32.vlgmr.msra.gmra.mxu1 %v2937_v5 }
 0x2d7   :  { %2736 = vmatpush3.msra.mxu1 %v3207_v3  ;;  %2767 = vmatprep.mubr.msk.f32.mxu1 %vm3121_vm0, %v4033_v19  ;;  %v214_v3 = vadd.f32 %v3478_v34, %v3409_v23  ;;  %v3771_v34 = vld [vmem:[#allocation12 + $0x28] sm:$0xff] }
 0x2d8   :  { %2737 = vmatprep.subr.mxu1 %v4033_v19 }
 0x2d9   :  { %2738 = vmatpush3.msra.mxu1 %v3210_v4 }
 0x2da   :  { %2739 = vmatprep.subr.mxu1 %v4033_v19 }
 0x2db   :  { %2740 = vmatpush3.msra.mxu1 %v3213_v6 }
 0x2dc   :  { %2741 = vmatprep.subr.mxu1 %v4033_v19 }
 0x2dd   :  { %2742 = vmatpush3.msra.mxu1 %v3217_v8 }
 0x2de   :  { %v3579_v35 = vpop.eup %2938  ;;  %2743 = vmatprep.subr.mxu1 %v4033_v19 }
 0x2df   :  { %852 = vmatprep.mubr.f32.mxu0 %v3579_v35  ;;  %2744 = vmatpush3.msra.mxu1 %v3221_v10 }
 0x2e0   :  { %853 = vmatmul.mubr.f32.vlgmr.msra.gmra.mxu0 %v2937_v5  ;;  %2745 = vmatprep.subr.mxu1 %v4033_v19  ;;  %v3777_v5 = vld [vmem:[#allocation12 + $0x20] sm:$0xff] }
 0x2e1   :  { %2746 = vmatpush3.msra.mxu1 %v3225_v12  ;;  %2285 = vmatpush3.msra.mxu0 %v3272_v36 }
 0x2e2   :  { %2747 = vmatprep.subr.mxu1 %v4033_v19  ;;  %2286 = vmatprep.subr.mxu0 %v3275_v37  ;;  %v3674_v37 = vld [vmem:[#allocation11 + $0x40] sm:$0xff] }
 0x2e3   :  { %2748 = vmatpush3.msra.mxu1 %v3229_v14  ;;  %2287 = vmatpush3.msra.mxu0 %v3279_v38  ;;  %v3678_v38 = vld [vmem:[#allocation11 + $0x38] sm:$0xff] }
 0x2e4   :  { %2749 = vmatprep.subr.mxu1 %v4033_v19  ;;  %2288 = vmatprep.subr.mxu0 %v3283_v39  ;;  %v3682_v39 = vld [vmem:[#allocation11 + $0x30] sm:$0xff] }
 0x2e5   :  { %2750 = vmatpush3.msra.mxu1 %v3233_v16  ;;  %2289 = vmatpush3.msra.mxu0 %v3287_v40  ;;  %v3684_v40 = vld [vmem:[#allocation12 + $0xf8] sm:$0xff] }
 0x2e6   :  { %2751 = vmatprep.subr.mxu1 %v4033_v19  ;;  %2290 = vmatprep.subr.mxu0 %v3291_v41  ;;  %v3686_v41 = vld [vmem:[#allocation12 + $0x78] sm:$0xff] }
 0x2e7   :  { %2752 = vmatpush3.msra.mxu1 %v3237_v18  ;;  %2291 = vmatpush3.msra.mxu0 %v3295_v42  ;;  %v3641_v18 = vld [vmem:[#allocation11 + $0x78] sm:$0xff]  ;;  %v3690_v42 = vld [vmem:[#allocation11 + $0x28] sm:$0xff] }
 0x2e8   :  { %2753 = vmatprep.subr.mxu1 %v4033_v19  ;;  %2292 = vmatprep.subr.mxu0 %v3299_v43  ;;  %v3692_v43 = vld [vmem:[#allocation12 + $0xf0] sm:$0xff] }
 0x2e9   :  { %2754 = vmatpush3.msra.mxu1 %v3241_v20  ;;  %2293 = vmatpush3.msra.mxu0 %v3303_v44  ;;  %v3694_v44 = vld [vmem:[#allocation12 + $0x70] sm:$0xff] }
 0x2ea   :  { %2755 = vmatprep.subr.mxu1 %v4033_v19  ;;  %2294 = vmatprep.subr.mxu0 %v3307_v45  ;;  %v3698_v45 = vld [vmem:[#allocation11 + $0x20] sm:$0xff] }
 0x2eb   :  { %2756 = vmatpush3.msra.mxu1 %v3245_v22  ;;  %2295 = vmatpush3.msra.mxu0 %v3339_v46  ;;  %v3643_v22 = vld [vmem:[#allocation11 + $0x70] sm:$0xff]  ;;  %v3700_v46 = vld [vmem:[#allocation12 + $0xe8] sm:$0xff] }
 0x2ec   :  { %2757 = vmatprep.subr.mxu1 %v4033_v19  ;;  %2296 = vmatprep.subr.mxu0 %v3342_v47  ;;  %v3704_v47 = vld [vmem:[#allocation12 + $0x68] sm:$0xff] }
 0x2ed   :  { %2758 = vmatpush3.msra.mxu1 %v3249_v24  ;;  %2297 = vmatpush3.msra.mxu0 %v3345_v48  ;;  %v3649_v24 = vld [vmem:[#allocation11 + $0x68] sm:$0xff]  ;;  %v3708_v48 = vld [vmem:[#allocation11 + $0x18] sm:$0xff] }
 0x2ee   :  { %2759 = vmatprep.subr.mxu1 %v4033_v19  ;;  %2298 = vmatprep.subr.mxu0 %v3348_v49  ;;  %v3710_v49 = vld [vmem:[#allocation12 + $0xe0] sm:$0xff] }
 0x2ef   :  { %2760 = vmatpush3.msra.mxu1 %v3253_v26  ;;  %2299 = vmatpush3.msra.mxu0 %v3351_v50  ;;  %v3653_v26 = vld [vmem:[#allocation11 + $0x60] sm:$0xff] }
 0x2f0   :  { %2761 = vmatprep.subr.mxu1 %v4033_v19  ;;  %2300 = vmatprep.subr.mxu0 %v3354_v51  ;;  %v3714_v50 = vld [vmem:[#allocation12 + $0x60] sm:$0xff]  ;;  %v3718_v51 = vld [vmem:[#allocation11 + $0x10] sm:$0xff] }
 0x2f1   :  { %2762 = vmatpush3.msra.mxu1 %v3257_v28  ;;  %2301 = vmatpush3.msra.mxu0 %v3357_v53  ;;  %v3657_v28 = vld [vmem:[#allocation11 + $0x58] sm:$0xff] }
 0x2f2   :  { %2763 = vmatprep.subr.mxu1 %v4033_v19  ;;  %2302 = vmatprep.subr.mxu0 %v3360_v55  ;;  %v3720_v53 = vld [vmem:[#allocation12 + $0xd8] sm:$0xff] }
 0x2f3   :  { %2764 = vmatpush3.msra.mxu1 %v3262_v31  ;;  %2303 = vmatpush3.msra.mxu0 %v3363_v56  ;;  %v3661_v31 = vld [vmem:[#allocation11 + $0x50] sm:$0xff]  ;;  %v3724_v55 = vld [vmem:[#allocation12 + $0x58] sm:$0xff]  ;;  %v3728_v56 = vld [vmem:[#allocation11 + $0x8] sm:$0xff] }
 0x2f4   :  { %2765 = vmatprep.subr.mxu1 %v4033_v19  ;;  %2304 = vmatprep.subr.mxu0 %v3365_v57  ;;  %v3735_v57 = vld [vmem:[#allocation12 + $0xd0] sm:$0xff] }
 0x2f5   :  { %2766 = vmatpush3.msra.mxu1 %v3265_v33  ;;  %2305 = vmatpush3.msra.mxu0 %v3368_v59  ;;  %v3665_v33 = vld [vmem:[#allocation11 + $0x48] sm:$0xff]  ;;  %v3739_v59 = vld [vmem:[#allocation12 + $0x50] sm:$0xff] }
 0x2f6   :  { %2306 = vmatprep.subr.mxu0 %v3370_v61  ;;  %2770 = vmatprep.subr.mxu1 %v4033_v19  ;;  %v3741_v61 = vld [vmem:[#allocation11] sm:$0xff] }
 0x2f7   :  { %2307 = vmatpush3.msra.mxu0 %v3373_v62  ;;  %v3745_v62 = vld [vmem:[#allocation12 + $0xc8] sm:$0xff] }
 0x2f8   :  { %2308 = vmatprep.subr.mxu0 %v3376_v1  ;;  %v3748_v1 = vld [vmem:[#allocation12 + $0x48] sm:$0xff] }
 0x2f9   :  { %2309 = vmatpush3.msra.mxu0 %v3379_v2  ;;  %v3752_v2 = vld [vmem:[#allocation12 + $0xc0] sm:$0xff] }
 0x2fa   :  { %2310 = vmatprep.subr.mxu0 %v3382_v7  ;;  %v3755_v7 = vld [vmem:[#allocation12 + $0x40] sm:$0xff] }
 0x2fb   :  { %2311 = vmatpush3.msra.mxu0 %v3385_v9  ;;  %v3758_v9 = vld [vmem:[#allocation12 + $0xb8] sm:$0xff] }
 0x2fc   :  { %2312 = vmatprep.subr.mxu0 %v3388_v11  ;;  %v3761_v11 = vld [vmem:[#allocation12 + $0x38] sm:$0xff] }
 0x2fd   :  { %2313 = vmatpush3.msra.mxu0 %v3391_v13  ;;  %v3764_v13 = vld [vmem:[#allocation12 + $0xb0] sm:$0xff] }
 0x2fe   :  { %2314 = vmatprep.subr.mxu0 %v3394_v15  ;;  %v3766_v15 = vld [vmem:[#allocation12 + $0x30] sm:$0xff] }
 0x2ff   :  { %2315 = vmatpush3.msra.mxu0 %v3398_v17  ;;  %v3768_v17 = vld [vmem:[#allocation12 + $0xa8] sm:$0xff] }
 0x300   :  { %2336 = vmatprep.subr.mxu0 %v3684_v40 }
 0x396   :  { %v948_v4 = vpop.f32.mrf.mxu1 }
 0x397   :  { %v952_v6 = vadd.f32 %v948_v4, %v214_v3  ;;  %v219_v3 = vadd.f32 %v3409_v23, %v3484_v58 }
 0x398   :  { %v2734_v8 = vpop.f32.mrf.mxu1 }
 0x399   :  { %2940 = vtanh.f32 %v952_v6 }
 0x3a0   :  { %v2264_v10 = vpop.f32.mrf.mxu0 }
 0x3a2   :  { %v2265_v12 = vpop.f32.mrf.mxu0 }
 0x3a3   :  { %v2266_v14 = vadd.f32 %v2265_v12, %v2264_v10 }
 0x3a5   :  { %v855_v16 = vadd.f32 %v2266_v14, %v3495_v29 }
 0x3a6   :  { %v2941_v20 = vpop.eup %2940 }
 0x3a7   :  { %2942 = vtanh.f32 %v855_v16  ;;  %2768 = vmatmul.mubr.f32.vlgmr.msra.gmra.mxu1 %v2941_v20 }
 0x3a8   :  { %2771 = vmatpush3.msra.mxu1 %v3641_v18  ;;  %2802 = vmatprep.mubr.msk.f32.mxu1 %vm3121_vm0, %v4033_v19 }
 0x3a9   :  { %2772 = vmatprep.subr.mxu1 %v4033_v19 }
 0x3aa   :  { %2773 = vmatpush3.msra.mxu1 %v3643_v22 }
 0x3ab   :  { %2774 = vmatprep.subr.mxu1 %v4033_v19 }
 0x3ac   :  { %2775 = vmatpush3.msra.mxu1 %v3649_v24 }
 0x3ad   :  { %2776 = vmatprep.subr.mxu1 %v4033_v19 }
 0x3ae   :  { %2777 = vmatpush3.msra.mxu1 %v3653_v26 }
 0x3af   :  { %2778 = vmatprep.subr.mxu1 %v4033_v19 }
 0x3b0   :  { %2779 = vmatpush3.msra.mxu1 %v3657_v28 }
 0x3b1   :  { %2780 = vmatprep.subr.mxu1 %v4033_v19 }
 0x3b2   :  { %2781 = vmatpush3.msra.mxu1 %v3661_v31 }
 0x3b3   :  { %2782 = vmatprep.subr.mxu1 %v4033_v19 }
 0x3b4   :  { %v3669_v36 = vpop.eup %2942  ;;  %2783 = vmatpush3.msra.mxu1 %v3665_v33 }
 0x3b5   :  { %1058 = vmatprep.mubr.f32.mxu0 %v3669_v36  ;;  %2784 = vmatprep.subr.mxu1 %v4033_v19 }
 0x3b6   :  { %1059 = vmatmul.mubr.f32.vlgmr.msra.gmra.mxu0 %v2941_v20  ;;  %2785 = vmatpush3.msra.mxu1 %v3674_v37 }
 0x3b7   :  { %2786 = vmatprep.subr.mxu1 %v4033_v19  ;;  %2337 = vmatpush3.msra.mxu0 %v3686_v41 }
 0x3b8   :  { %2787 = vmatpush3.msra.mxu1 %v3678_v38  ;;  %2338 = vmatprep.subr.mxu0 %v3692_v43 }
 0x3b9   :  { %2788 = vmatprep.subr.mxu1 %v4033_v19  ;;  %2339 = vmatpush3.msra.mxu0 %v3694_v44 }
 0x3ba   :  { %2789 = vmatpush3.msra.mxu1 %v3682_v39  ;;  %2340 = vmatprep.subr.mxu0 %v3700_v46 }
 0x3bb   :  { %2790 = vmatprep.subr.mxu1 %v4033_v19  ;;  %2341 = vmatpush3.msra.mxu0 %v3704_v47 }
 0x3bc   :  { %2791 = vmatpush3.msra.mxu1 %v3690_v42  ;;  %2342 = vmatprep.subr.mxu0 %v3710_v49 }
 0x3bd   :  { %2792 = vmatprep.subr.mxu1 %v4033_v19  ;;  %2343 = vmatpush3.msra.mxu0 %v3714_v50 }
 0x3be   :  { %2793 = vmatpush3.msra.mxu1 %v3698_v45  ;;  %2344 = vmatprep.subr.mxu0 %v3720_v53 }
 0x3bf   :  { %2794 = vmatprep.subr.mxu1 %v4033_v19  ;;  %2345 = vmatpush3.msra.mxu0 %v3724_v55 }
 0x3c0   :  { %2795 = vmatpush3.msra.mxu1 %v3708_v48  ;;  %2346 = vmatprep.subr.mxu0 %v3735_v57 }
 0x3c1   :  { %2796 = vmatprep.subr.mxu1 %v4033_v19  ;;  %2347 = vmatpush3.msra.mxu0 %v3739_v59 }
 0x3c2   :  { %2797 = vmatpush3.msra.mxu1 %v3718_v51  ;;  %2348 = vmatprep.subr.mxu0 %v3745_v62 }
 0x3c3   :  { %2798 = vmatprep.subr.mxu1 %v4033_v19  ;;  %2349 = vmatpush3.msra.mxu0 %v3748_v1 }
 0x3c4   :  { %2799 = vmatpush3.msra.mxu1 %v3728_v56  ;;  %2350 = vmatprep.subr.mxu0 %v3752_v2 }
 0x3c5   :  { %2800 = vmatprep.subr.mxu1 %v4033_v19  ;;  %2351 = vmatpush3.msra.mxu0 %v3755_v7 }
 0x3c6   :  { %2801 = vmatpush3.msra.mxu1 %v3741_v61  ;;  %2352 = vmatprep.subr.mxu0 %v3758_v9 }
 0x3c7   :  { %2805 = vmatprep.subr.mxu1 %v4033_v19  ;;  %2353 = vmatpush3.msra.mxu0 %v3761_v11 }
 0x3c8   :  { %2354 = vmatprep.subr.mxu0 %v3764_v13 }
 0x3c9   :  { %2355 = vmatpush3.msra.mxu0 %v3766_v15 }
 0x3ca   :  { %2356 = vmatprep.subr.mxu0 %v3768_v17 }
 0x3cb   :  { %2357 = vmatpush3.msra.mxu0 %v3771_v34 }
 0x3cc   :  { %2358 = vmatprep.subr.mxu0 %v3774_v52 }
 0x3cd   :  { %2359 = vmatpush3.msra.mxu0 %v3777_v5 }
 0x3ce   :  { %2360 = vmatprep.subr.mxu0 %v3780_v0 }
 0x3cf   :  { %2361 = vmatpush3.msra.mxu0 %v3783_v54 }
 0x3d0   :  { %2362 = vmatprep.subr.mxu0 %v3786_v60 }
 0x3d1   :  { %2363 = vmatpush3.msra.mxu0 %v3789_v21 }
 0x3d2   :  { %2364 = vmatprep.subr.mxu0 %v3792_v25 }
 0x3d3   :  { %2365 = vmatpush3.msra.mxu0 %v3795_v27 }
 0x3d4   :  { %2366 = vmatprep.subr.mxu0 %v3798_v30 }
 0x3d5   :  { %2367 = vmatpush3.msra.mxu0 %v3801_v32 }
 0x3d6   :  { %2388 = vmatprep.subr.mxu0 %v3684_v40 }
 0x467   :  { %v1154_v4 = vpop.f32.mrf.mxu1 }
 0x468   :  { %v1158_v6 = vadd.f32 %v1154_v4, %v219_v3 }
 0x469   :  { %v2769_v8 = vpop.f32.mrf.mxu1 }
 0x46a   :  { %2944 = vtanh.f32 %v1158_v6 }
 0x476   :  { %v2316_v10 = vpop.f32.mrf.mxu0 }
 0x477   :  { %v2945_v12 = vpop.eup %2944 }
 0x478   :  { %v2317_v14 = vpop.f32.mrf.mxu0  ;;  %2803 = vmatmul.mubr.f32.vlgmr.msra.gmra.mxu1 %v2945_v12 }
 0x479   :  { %v2318_v16 = vadd.f32 %v2317_v14, %v2316_v10  ;;  %2806 = vmatpush3.msra.mxu1 %v3641_v18  ;;  %2837 = vmatprep.mubr.msk.f32.mxu1 %vm3121_vm0, %v4033_v19 }
 0x47a   :  { %2807 = vmatprep.subr.mxu1 %v4033_v19 }
 0x47b   :  { %v1061_v20 = vadd.f32 %v2318_v16, %v3495_v29  ;;  %2808 = vmatpush3.msra.mxu1 %v3643_v22  ;;  %v4035_v29 = vld [vmem:[#allocation23_spill] sm:$0xff] }
 0x47c   :  { %2809 = vmatprep.subr.mxu1 %v4033_v19  ;;  %v224_v3 = vadd.f32 %v4035_v29, %v3409_v23  ;;  %v3890_v23 = vld [vmem:[%s4023_s5] ss:$0 sm:$0xff] }
 0x47d   :  { %2946 = vtanh.f32 %v1061_v20  ;;  %2810 = vmatpush3.msra.mxu1 %v3649_v24  ;;  %v1909_v20 = vld [vmem:[#allocation14 + $0x40] sm:$0xff] }
 0x47e   :  { %2811 = vmatprep.subr.mxu1 %v4033_v19 }
 0x47f   :  { %2812 = vmatpush3.msra.mxu1 %v3653_v26 }
 0x480   :  { %2813 = vmatprep.subr.mxu1 %v4033_v19 }
 0x481   :  { %2814 = vmatpush3.msra.mxu1 %v3657_v28 }
 0x482   :  { %2815 = vmatprep.subr.mxu1 %v4033_v19 }
 0x483   :  { %2816 = vmatpush3.msra.mxu1 %v3661_v31 }
 0x484   :  { %2817 = vmatprep.subr.mxu1 %v4033_v19 }
 0x485   :  { %2818 = vmatpush3.msra.mxu1 %v3665_v33 }
 0x486   :  { %2819 = vmatprep.subr.mxu1 %v4033_v19 }
 0x487   :  { %2820 = vmatpush3.msra.mxu1 %v3674_v37 }
 0x488   :  { %2821 = vmatprep.subr.mxu1 %v4033_v19 }
 0x489   :  { %2822 = vmatpush3.msra.mxu1 %v3678_v38 }
 0x48a   :  { %v3829_v58 = vpop.eup %2946  ;;  %2823 = vmatprep.subr.mxu1 %v4033_v19 }
 0x48b   :  { %1264 = vmatprep.mubr.f32.mxu0 %v3829_v58  ;;  %2824 = vmatpush3.msra.mxu1 %v3682_v39 }
 0x48c   :  { %1265 = vmatmul.mubr.f32.vlgmr.msra.gmra.mxu0 %v2945_v12  ;;  %2825 = vmatprep.subr.mxu1 %v4033_v19 }
 0x48d   :  { %2826 = vmatpush3.msra.mxu1 %v3690_v42  ;;  %2389 = vmatpush3.msra.mxu0 %v3686_v41 }
 0x48e   :  { %2827 = vmatprep.subr.mxu1 %v4033_v19  ;;  %2390 = vmatprep.subr.mxu0 %v3692_v43 }
 0x48f   :  { %2828 = vmatpush3.msra.mxu1 %v3698_v45  ;;  %2391 = vmatpush3.msra.mxu0 %v3694_v44 }
 0x490   :  { %2829 = vmatprep.subr.mxu1 %v4033_v19  ;;  %2392 = vmatprep.subr.mxu0 %v3700_v46 }
 0x491   :  { %2830 = vmatpush3.msra.mxu1 %v3708_v48  ;;  %2393 = vmatpush3.msra.mxu0 %v3704_v47 }
 0x492   :  { %2831 = vmatprep.subr.mxu1 %v4033_v19  ;;  %2394 = vmatprep.subr.mxu0 %v3710_v49 }
 0x493   :  { %2832 = vmatpush3.msra.mxu1 %v3718_v51  ;;  %2395 = vmatpush3.msra.mxu0 %v3714_v50 }
 0x494   :  { %2833 = vmatprep.subr.mxu1 %v4033_v19  ;;  %2396 = vmatprep.subr.mxu0 %v3720_v53 }
 0x495   :  { %2834 = vmatpush3.msra.mxu1 %v3728_v56  ;;  %2397 = vmatpush3.msra.mxu0 %v3724_v55 }
 0x496   :  { %2835 = vmatprep.subr.mxu1 %v4033_v19  ;;  %2398 = vmatprep.subr.mxu0 %v3735_v57 }
 0x497   :  { %2836 = vmatpush3.msra.mxu1 %v3741_v61  ;;  %2399 = vmatpush3.msra.mxu0 %v3739_v59 }
 0x498   :  { %2400 = vmatprep.subr.mxu0 %v3745_v62  ;;  %2840 = vmatprep.subr.mxu1 %v4033_v19 }
 0x499   :  { %2401 = vmatpush3.msra.mxu0 %v3748_v1 }
 0x49a   :  { %2402 = vmatprep.subr.mxu0 %v3752_v2 }
 0x49b   :  { %2403 = vmatpush3.msra.mxu0 %v3755_v7 }
 0x49c   :  { %2404 = vmatprep.subr.mxu0 %v3758_v9 }
 0x49d   :  { %2405 = vmatpush3.msra.mxu0 %v3761_v11 }
 0x49e   :  { %2406 = vmatprep.subr.mxu0 %v3764_v13 }
 0x49f   :  { %2407 = vmatpush3.msra.mxu0 %v3766_v15 }
 0x4a0   :  { %2408 = vmatprep.subr.mxu0 %v3768_v17 }
 0x4a1   :  { %2409 = vmatpush3.msra.mxu0 %v3771_v34 }
 0x4a2   :  { %2410 = vmatprep.subr.mxu0 %v3774_v52 }
 0x4a3   :  { %2411 = vmatpush3.msra.mxu0 %v3777_v5 }
 0x4a4   :  { %2412 = vmatprep.subr.mxu0 %v3780_v0 }
 0x4a5   :  { %2413 = vmatpush3.msra.mxu0 %v3783_v54 }
 0x4a6   :  { %2414 = vmatprep.subr.mxu0 %v3786_v60 }
 0x4a7   :  { %2415 = vmatpush3.msra.mxu0 %v3789_v21 }
 0x4a8   :  { %2416 = vmatprep.subr.mxu0 %v3792_v25 }
 0x4a9   :  { %2417 = vmatpush3.msra.mxu0 %v3795_v27 }
 0x4aa   :  { %2418 = vmatprep.subr.mxu0 %v3798_v30 }
 0x4ab   :  { %2419 = vmatpush3.msra.mxu0 %v3801_v32 }
 0x4ac   :  { %2440 = vmatprep.subr.mxu0 %v3684_v40 }
 0x538   :  { %v1360_v4 = vpop.f32.mrf.mxu1 }
 0x539   :  { %v1364_v6 = vadd.f32 %v1360_v4, %v224_v3  ;;  %v1908_v3 = vld [vmem:[#allocation14 + $0x38] sm:$0xff]  ;;  %v1907_v4 = vld [vmem:[#allocation14 + $0x30] sm:$0xff] }
 0x53a   :  { %v2804_v8 = vpop.f32.mrf.mxu1 }
 0x53b   :  { %2948 = vtanh.f32 %v1364_v6  ;;  %v1906_v6 = vld [vmem:[#allocation14 + $0x28] sm:$0xff]  ;;  %v1905_v8 = vld [vmem:[#allocation14 + $0x20] sm:$0xff] }
 0x548   :  { %v2949_v10 = vpop.eup %2948 }
 0x549   :  { %2838 = vmatmul.mubr.f32.vlgmr.msra.gmra.mxu1 %v2949_v10 }
 0x54a   :  { %2841 = vmatpush3.msra.mxu1 %v3641_v18  ;;  %2872 = vmatprep.mubr.msk.f32.mxu1 %vm3121_vm0, %v4033_v19 }
 0x54b   :  { %2842 = vmatprep.subr.mxu1 %v4033_v19 }
 0x54c   :  { %v2368_v12 = vpop.f32.mrf.mxu0  ;;  %2843 = vmatpush3.msra.mxu1 %v3643_v22 }
 0x54d   :  { %2844 = vmatprep.subr.mxu1 %v4033_v19 }
 0x54e   :  { %v2369_v14 = vpop.f32.mrf.mxu0  ;;  %2845 = vmatpush3.msra.mxu1 %v3649_v24  ;;  %v3958_v24 = vld [vmem:[%s4021_s3] ss:$0 sm:$0xff] }
 0x54f   :  { %v2370_v16 = vadd.f32 %v2369_v14, %v2368_v12  ;;  %2846 = vmatprep.subr.mxu1 %v4033_v19  ;;  %v1903_v12 = vld [vmem:[#allocation14 + $0x10] sm:$0xff]  ;;  %v1902_v14 = vld [vmem:[#allocation14 + $0x8] sm:$0xff] }
 0x550   :  { %2847 = vmatpush3.msra.mxu1 %v3653_v26  ;;  %v229_v26 = vadd.f32 %v3958_v24, %v3488_v63  ;;  %v1911_v63 = vld [vmem:[#allocation14 + $0x50] sm:$0xff] }
 0x551   :  { %v1267_v18 = vadd.f32 %v2370_v16, %v3890_v23  ;;  %2848 = vmatprep.subr.mxu1 %v4033_v19  ;;  %v1901_v16 = vld [vmem:[#allocation14] sm:$0xff] }
 0x552   :  { %2849 = vmatpush3.msra.mxu1 %v3657_v28 }
 0x553   :  { %2950 = vtanh.f32 %v1267_v18  ;;  %2850 = vmatprep.subr.mxu1 %v4033_v19 }
 0x554   :  { %2851 = vmatpush3.msra.mxu1 %v3661_v31 }
 0x555   :  { %2852 = vmatprep.subr.mxu1 %v4033_v19 }
 0x556   :  { %2853 = vmatpush3.msra.mxu1 %v3665_v33 }
 0x557   :  { %2854 = vmatprep.subr.mxu1 %v4033_v19 }
 0x558   :  { %2855 = vmatpush3.msra.mxu1 %v3674_v37 }
 0x559   :  { %2856 = vmatprep.subr.mxu1 %v4033_v19 }
 0x55a   :  { %2857 = vmatpush3.msra.mxu1 %v3678_v38  ;;  %v1915_v38 = vld [vmem:[#allocation14 + $0x70] sm:$0xff] }
 0x55b   :  { %2858 = vmatprep.subr.mxu1 %v4033_v19 }
 0x55c   :  { %2859 = vmatpush3.msra.mxu1 %v3682_v39  ;;  %v4036_v39 = vld [vmem:[#allocation25_spill] sm:$0xff] }
 0x55d   :  { %2860 = vmatprep.subr.mxu1 %v4033_v19 }
 0x55e   :  { %2861 = vmatpush3.msra.mxu1 %v3690_v42  ;;  %v1913_v42 = vld [vmem:[#allocation14 + $0x60] sm:$0xff] }
 0x55f   :  { %2862 = vmatprep.subr.mxu1 %v4033_v19 }
 0x560   :  { %v3911_v22 = vpop.eup %2950  ;;  %2863 = vmatpush3.msra.mxu1 %v3698_v45  ;;  %v1912_v45 = vld [vmem:[#allocation14 + $0x58] sm:$0xff] }
 0x561   :  { %1470 = vmatprep.mubr.f32.mxu0 %v3911_v22  ;;  %2864 = vmatprep.subr.mxu1 %v4033_v19 }
 0x562   :  { %1471 = vmatmul.mubr.f32.vlgmr.msra.gmra.mxu0 %v2949_v10  ;;  %2865 = vmatpush3.msra.mxu1 %v3708_v48  ;;  %v1904_v10 = vld [vmem:[#allocation14 + $0x18] sm:$0xff] }
 0x563   :  { %2866 = vmatprep.subr.mxu1 %v4033_v19  ;;  %2441 = vmatpush3.msra.mxu0 %v3686_v41 }
 0x564   :  { %2867 = vmatpush3.msra.mxu1 %v3718_v51  ;;  %2442 = vmatprep.subr.mxu0 %v3692_v43  ;;  %v1910_v51 = vld [vmem:[#allocation14 + $0x48] sm:$0xff] }
 0x565   :  { %2868 = vmatprep.subr.mxu1 %v4033_v19  ;;  %2443 = vmatpush3.msra.mxu0 %v3694_v44 }
 0x566   :  { %2869 = vmatpush3.msra.mxu1 %v3728_v56  ;;  %2444 = vmatprep.subr.mxu0 %v3700_v46 }
 0x567   :  { %2870 = vmatprep.subr.mxu1 %v4033_v19  ;;  %2445 = vmatpush3.msra.mxu0 %v3704_v47  ;;  %v1916_v19 = vld [vmem:[#allocation14 + $0x78] sm:$0xff] }
 0x568   :  { %2871 = vmatpush3.msra.mxu1 %v3741_v61  ;;  %2446 = vmatprep.subr.mxu0 %v3710_v49 }
 0x569   :  { %2447 = vmatpush3.msra.mxu0 %v3714_v50  ;;  %2875 = vmatprep.subr.mxu1 %v1916_v19 }
 0x56a   :  { %2448 = vmatprep.subr.mxu0 %v3720_v53 }
 0x56b   :  { %2449 = vmatpush3.msra.mxu0 %v3724_v55 }
 0x56c   :  { %2450 = vmatprep.subr.mxu0 %v3735_v57 }
 0x56d   :  { %2451 = vmatpush3.msra.mxu0 %v3739_v59 }
 0x56e   :  { %2452 = vmatprep.subr.mxu0 %v3745_v62 }
 0x56f   :  { %2453 = vmatpush3.msra.mxu0 %v3748_v1 }
 0x570   :  { %2454 = vmatprep.subr.mxu0 %v3752_v2 }
 0x571   :  { %2455 = vmatpush3.msra.mxu0 %v3755_v7 }
 0x572   :  { %2456 = vmatprep.subr.mxu0 %v3758_v9 }
 0x573   :  { %2457 = vmatpush3.msra.mxu0 %v3761_v11 }
 0x574   :  { %2458 = vmatprep.subr.mxu0 %v3764_v13 }
 0x575   :  { %2459 = vmatpush3.msra.mxu0 %v3766_v15 }
 0x576   :  { %2460 = vmatprep.subr.mxu0 %v3768_v17 }
 0x577   :  { %2461 = vmatpush3.msra.mxu0 %v3771_v34 }
 0x578   :  { %2462 = vmatprep.subr.mxu0 %v3774_v52 }
 0x579   :  { %2463 = vmatpush3.msra.mxu0 %v3777_v5 }
 0x57a   :  { %2464 = vmatprep.subr.mxu0 %v3780_v0 }
 0x57b   :  { %2465 = vmatpush3.msra.mxu0 %v3783_v54 }
 0x57c   :  { %2466 = vmatprep.subr.mxu0 %v3786_v60 }
 0x57d   :  { %2467 = vmatpush3.msra.mxu0 %v3789_v21 }
 0x57e   :  { %2468 = vmatprep.subr.mxu0 %v3792_v25 }
 0x57f   :  { %2469 = vmatpush3.msra.mxu0 %v3795_v27 }
 0x580   :  { %2470 = vmatprep.subr.mxu0 %v3798_v30 }
 0x581   :  { %2471 = vmatpush3.msra.mxu0 %v3801_v32 }
 0x582   :  { %2492 = vmatprep.subr.mxu0 %v3684_v40  ;;  %v1914_v40 = vld [vmem:[#allocation14 + $0x68] sm:$0xff] }
 0x609   :  { %v1566_v28 = vpop.f32.mrf.mxu1 }
 0x60a   :  { %v1570_v31 = vadd.f32 %v1566_v28, %v229_v26 }
 0x60b   :  { %v2839_v33 = vpop.f32.mrf.mxu1 }
 0x60c   :  { %2952 = vtanh.f32 %v1570_v31 }
 0x619   :  { %v2953_v37 = vpop.eup %2952 }
 0x61a   :  { %2873 = vmatmul.mubr.f32.vlgmr.msra.gmra.mxu1 %v2953_v37 }
 0x61b   :  { %2876 = vmatpush3.msra.mxu1 %v1916_v19  ;;  %2907 = vmatprep.mubr.f32.mxu1 %v4036_v39 }
 0x61c   :  { %2877 = vmatprep.subr.mxu1 %v1915_v38 }
 0x61d   :  { %2878 = vmatpush3.msra.mxu1 %v1915_v38 }
 0x61e   :  { %2879 = vmatprep.subr.mxu1 %v1914_v40 }
 0x61f   :  { %2880 = vmatpush3.msra.mxu1 %v1914_v40 }
 0x620   :  { %2881 = vmatprep.subr.mxu1 %v1913_v42 }
 0x621   :  { %2882 = vmatpush3.msra.mxu1 %v1913_v42 }
 0x622   :  { %2883 = vmatprep.subr.mxu1 %v1912_v45  ;;  %v2420_v48 = vpop.f32.mrf.mxu0 }
 0x623   :  { %2884 = vmatpush3.msra.mxu1 %v1912_v45 }
 0x624   :  { %2885 = vmatprep.subr.mxu1 %v1911_v63  ;;  %v2421_v56 = vpop.f32.mrf.mxu0 }
 0x625   :  { %v2422_v61 = vadd.f32 %v2421_v56, %v2420_v48  ;;  %2886 = vmatpush3.msra.mxu1 %v1911_v63 }
 0x626   :  { %2887 = vmatprep.subr.mxu1 %v1910_v51 }
 0x627   :  { %v1473_v29 = vadd.f32 %v2422_v61, %v3890_v23  ;;  %2888 = vmatpush3.msra.mxu1 %v1910_v51 }
 0x628   :  { %2889 = vmatprep.subr.mxu1 %v1909_v20 }
 0x629   :  { %2954 = vtanh.f32 %v1473_v29  ;;  %2890 = vmatpush3.msra.mxu1 %v1909_v20 }
 0x62a   :  { %2891 = vmatprep.subr.mxu1 %v1908_v3 }
 0x62b   :  { %2892 = vmatpush3.msra.mxu1 %v1908_v3 }
 0x62c   :  { %2893 = vmatprep.subr.mxu1 %v1907_v4 }
 0x62d   :  { %2894 = vmatpush3.msra.mxu1 %v1907_v4 }
 0x62e   :  { %2895 = vmatprep.subr.mxu1 %v1906_v6 }
 0x62f   :  { %2896 = vmatpush3.msra.mxu1 %v1906_v6 }
 0x630   :  { %2897 = vmatprep.subr.mxu1 %v1905_v8 }
 0x631   :  { %2898 = vmatpush3.msra.mxu1 %v1905_v8 }
 0x632   :  { %2899 = vmatprep.subr.mxu1 %v1904_v10 }
 0x633   :  { %2900 = vmatpush3.msra.mxu1 %v1904_v10 }
 0x634   :  { %2901 = vmatprep.subr.mxu1 %v1903_v12 }
 0x635   :  { %2902 = vmatpush3.msra.mxu1 %v1903_v12 }
 0x636   :  { %v2955_v18 = vpop.eup %2954  ;;  %2903 = vmatprep.subr.mxu1 %v1902_v14 }
 0x637   :  { %2904 = vmatpush3.msra.mxu1 %v1902_v14  ;;  %1676 = vmatprep.mubr.f32.mxu0 %v2955_v18 }
 0x638   :  { %2905 = vmatprep.subr.mxu1 %v1901_v16  ;;  %1677 = vmatmul.mubr.f32.vlgmr.msra.gmra.mxu0 %v2953_v37 }
 0x639   :  { %2906 = vmatpush3.msra.mxu1 %v1901_v16  ;;  %2493 = vmatpush3.msra.mxu0 %v3686_v41 }
 0x63a   :  { %2908 = vmatmul.mubr.f32.vlgmr.msra.gmra.mxu1 %v3579_v35  ;;  %2494 = vmatprep.subr.mxu0 %v3692_v43  ;;  %v4037_v35 = vld [vmem:[#allocation24_spill] sm:$0xff] }
 0x63b   :  { %2910 = vmatprep.mubr.f32.mxu1 %v3669_v36  ;;  %2495 = vmatpush3.msra.mxu0 %v3694_v44  ;;  %v234_v36 = vadd.f32 %v3958_v24, %v4037_v35 }
 0x63c   :  { %2496 = vmatprep.subr.mxu0 %v3700_v46 }
 0x63d   :  { %2497 = vmatpush3.msra.mxu0 %v3704_v47 }
 0x63e   :  { %2911 = vmatmul.mubr.f32.gmra.mxu1 %v3829_v58  ;;  %2498 = vmatprep.subr.mxu0 %v3710_v49  ;;  %v2086_v49 = vld [vmem:[%s4025_s7] ss:$0 sm:$0xff]  ;;  %s3122_s7 = smov [#allocation16]  }
 0x63f   :  { %2913 = vmatprep.mubr.f32.mxu1 %v3911_v22  ;;  %2499 = vmatpush3.msra.mxu0 %v3714_v50  ;;  %s2059_s20 = sshll.u32 %s3122_s7, 4  ;;  %s2060_s20 = int_to_ptr.vmem [resolvable:$true] %s2059_s20 }
 0x640   :  { %2500 = vmatprep.subr.mxu0 %v3720_v53  ;;  %s3063_s21 = scalar_lea.vmem %s2060_s20, 256  ;;  %p3068_p12 = scmp.lt.s32.totalorder %s2060_s20, %s2060_s20 }
 0x641   :  { %2501 = vmatpush3.msra.mxu0 %v3724_v55  ;;  %p3064_p11 = scmp.ne.s32.totalorder %s2060_s20, %s3063_s21  ;;  %p3069_p13 = scmp.lt.s32.totalorder %s3063_s21, %s3063_s21 }
 0x642   :  { %2914 = vmatmul.mubr.f32.gmra.mxu1 %v2955_v18  ;;  %2502 = vmatprep.subr.mxu0 %v3735_v57 }
 0x643   :  { %2503 = vmatpush3.msra.mxu0 %v3739_v59  ;;  %p3070_p0 = por %p3069_p13, %p3068_p12 }
 0x644   :  { %2504 = vmatprep.subr.mxu0 %v3745_v62 }
 0x645   :  { %2505 = vmatpush3.msra.mxu0 %v3748_v1  ;;  %p3071_p1 = pnand %p3070_p0, %p3064_p11 }
 0x646   :  { %2506 = vmatprep.subr.mxu0 %v3752_v2 }
 0x647   :  { %2507 = vmatpush3.msra.mxu0 %v3755_v7 }
 0x648   :  { %2508 = vmatprep.subr.mxu0 %v3758_v9 }
 0x649   :  { %2509 = vmatpush3.msra.mxu0 %v3761_v11 }
 0x64a   :  { %2510 = vmatprep.subr.mxu0 %v3764_v13 }
 0x64b   :  { %2511 = vmatpush3.msra.mxu0 %v3766_v15 }
 0x64c   :  { %2512 = vmatprep.subr.mxu0 %v3768_v17 }
 0x64d   :  { %2513 = vmatpush3.msra.mxu0 %v3771_v34 }
 0x64e   :  { %2514 = vmatprep.subr.mxu0 %v3774_v52 }
 0x64f   :  { %2515 = vmatpush3.msra.mxu0 %v3777_v5 }
 0x650   :  { %2516 = vmatprep.subr.mxu0 %v3780_v0 }
 0x651   :  { %2517 = vmatpush3.msra.mxu0 %v3783_v54 }
 0x652   :  { %2518 = vmatprep.subr.mxu0 %v3786_v60 }
 0x653   :  { %2519 = vmatpush3.msra.mxu0 %v3789_v21 }
 0x654   :  { %2520 = vmatprep.subr.mxu0 %v3792_v25 }
 0x655   :  { %2521 = vmatpush3.msra.mxu0 %v3795_v27 }
 0x656   :  { %2522 = vmatprep.subr.mxu0 %v3798_v30 }
 0x657   :  { %2523 = vmatpush3.msra.mxu0 %v3801_v32 }
 0x6da   :  { %v1772_v41 = vpop.f32.mrf.mxu1 }
 0x6db   :  { %v1776_v43 = vadd.f32 %v1772_v41, %v234_v36 }
 0x6dc   :  { %v2874_v44 = vpop.f32.mrf.mxu1 }
 0x6dd   :  { %2956 = vtanh.f32 %v1776_v43 }
 0x6ea   :  { %v2957_v46 = vpop.eup %2956 }
 0x6eb   :  { %2038 = vst [vmem:[#allocation16] sm:$0xff] %v2957_v46 }
 0x6f8   :  { %v2472_v47 = vpop.f32.mrf.mxu0 }
 0x6fa   :  { %v2909_v50 = vpop.f32.mrf.mxu1  ;;  %v2473_v53 = vpop.f32.mrf.mxu0 }
 0x6fb   :  { %v1996_v55 = vadd.f32 %v2909_v50, %v2086_v49  ;;  %v2474_v57 = vadd.f32 %v2473_v53, %v2472_v47 }
 0x6fc   :  { %v1990_v59 = vpop.f32.mrf.mxu1 }
 0x6fd   :  { %2030 = vst [vmem:[#allocation15 + $0x8] sm:$0xff] %v1996_v55  ;;  %v1679_v62 = vadd.f32 %v2474_v57, %v3890_v23  ;;  %v1991_v1 = vadd.f32 %v2086_v49, %v1990_v59 }
 0x6fe   :  { %v2912_v2 = vpop.f32.mrf.mxu1 }
 0x6ff   :  { %2958 = vtanh.f32 %v1679_v62  ;;  %2029 = vst [vmem:[#allocation15] sm:$0xff] %v1991_v1  ;;  %v2006_v7 = vadd.f32 %v2912_v2, %v2086_v49 }
 0x700   :  { %v2000_v9 = vpop.f32.mrf.mxu1 }
 0x701   :  { %2032 = vst [vmem:[#allocation15 + $0x18] sm:$0xff] %v2006_v7  ;;  %v2001_v11 = vadd.f32 %v2086_v49, %v2000_v9 }
 0x702   :  { %v2915_v13 = vpop.f32.mrf.mxu1 }
 0x703   :  { %2031 = vst [vmem:[#allocation15 + $0x10] sm:$0xff] %v2001_v11  ;;  %v2016_v15 = vadd.f32 %v2915_v13, %v2086_v49 }
 0x704   :  { %v2010_v17 = vpop.f32.mrf.mxu1 }
 0x705   :  { %2034 = vst [vmem:[#allocation15 + $0x28] sm:$0xff] %v2016_v15  ;;  %v2011_v34 = vadd.f32 %v2086_v49, %v2010_v17 }
 0x707   :  { %2033 = vst [vmem:[#allocation15 + $0x20] sm:$0xff] %v2011_v34 }
 0x70c   :  { %v2959_v52 = vpop.eup %2958 }
 0x70d   :  { %1882 = vmatprep.mubr.f32.mxu0 %v2959_v52  ;;  %2916 = vmatprep.mubr.f32.mxu1 %v2959_v52 }
 0x70e   :  { %1883 = vmatmul.mubr.f32.vlgmr.msra.gmra.mxu0 %v2957_v46 }
 0x7ce   :  { %v2524_v5 = vpop.f32.mrf.mxu0 }
 0x7d0   :  { %v2525_v0 = vpop.f32.mrf.mxu0 }
 0x7d1   :  { %v2526_v54 = vadd.f32 %v2525_v0, %v2524_v5 }
 0x7d3   :  { %v1885_v60 = vadd.f32 %v2526_v54, %v3890_v23 }
 0x7d5   :  { %2960 = vtanh.f32 %v1885_v60 }
 0x7e2   :  { %v2961_v21 = vpop.eup %2960 }
 0x7e3   :  { %2041 = vst [vmem:[#allocation16 + $0x8] sm:$0xff] %v2961_v21  ;;  %2917 = vmatmul.mubr.f32.gmra.mxu1 %v2961_v21 }
 0x7e4   :  { %3074 = shalt.err (!%p3071_p1)
}
 0x7e5   :  { %2065 = dma.vmem_to_hbm [thread:$0]  %s2060_s20, 256, %s4027_s9, [#allocation17], %s3115_s14, %s3115_s14, %s3116_s15  }
 0x7e6   :  { %s3123_s24 = smov [#allocation15]  }
 0x7e7   :  { %s2047_s1 = sshll.u32 %s3123_s24, 4  ;;  %s2048_s1 = int_to_ptr.vmem [resolvable:$true] %s2047_s1 }
 0x7e8   :  { %s3083_s25 = scalar_lea.vmem %s2048_s1, 1024  ;;  %p3088_p3 = scmp.lt.s32.totalorder %s2048_s1, %s2048_s1 }
 0x7e9   :  { %p3084_p2 = scmp.ne.s32.totalorder %s2048_s1, %s3083_s25  ;;  %p3089_p4 = scmp.lt.s32.totalorder %s3083_s25, %s3083_s25 }
 0x7eb   :  { %p3090_p5 = por %p3089_p4, %p3088_p3 }
 0x7ed   :  { %p3091_p6 = pnand %p3090_p5, %p3084_p2 }
 0x8a3   :  { %v2918_v25 = vpop.f32.mrf.mxu1 }
 0x8a4   :  { %v2026_v27 = vadd.f32 %v2918_v25, %v2086_v49 }
 0x8a5   :  { %v2020_v30 = vpop.f32.mrf.mxu1 }
 0x8a6   :  { %2036 = vst [vmem:[#allocation15 + $0x38] sm:$0xff] %v2026_v27  ;;  %v2021_v32 = vadd.f32 %v2086_v49, %v2020_v30 }
 0x8a8   :  { %2035 = vst [vmem:[#allocation15 + $0x30] sm:$0xff] %v2021_v32 }
 0x8a9   :  { %3094 = shalt.err (!%p3091_p6)
}
 0x8aa   :  { %2053 = dma.vmem_to_hbm [thread:$0]  %s2048_s1, 1024, %s4026_s8, [#allocation8], %s3115_s14, %s3115_s14, %s3116_s15  }
 0x8ab   :  { %3109 = dma.done.wait [#allocation8], 1024  }
 0x8ac   :  { %3110 = vsyncadd [#allocation8], 4294966272 }
 0x8ad   :  { %3111 = dma.done.wait [#allocation17], 256  }
 0x8ae   :  { %3112 = vsyncadd [#allocation17], 4294967040 }
 0x8af   :  { %2072 = vsyncpa [#allocation7], 1 }
 0x8b0   :  { %2073 = vsyncpa [#allocation10], 1 }
 0x8b1   :  { %2074 = vsyncpa [#allocation13], 1 }
 0x8b2   :  { %2075 = vsyncpa [#allocation8], 1 }
 0x8b3   :  { %2076 = vsyncpa [#allocation17], 1 }

</bundles_post_ra>
